<compile_context>
chip_gen: v6e
topology: v6e:2x2x1
jax: 0.10.0
libtpu: 0.0.40
codegen_flags: <defaults>
</compile_context>

<pallas_src>
import jax
import jax.numpy as jnp
import numpy as np
from jax.experimental import pallas as pl
from jax.experimental.pallas import tpu as pltpu


# ---------------------------------------------------------------------------
# Generic tiled  y = x @ W + b  kernel (used for the hoisted input projection
# and for the final vocab projection).
# ---------------------------------------------------------------------------
def matmul_bias_kernel(x_ref, w_ref, b_ref, y_ref):
    y_ref[...] = (
        jnp.dot(x_ref[...], w_ref[...], preferred_element_type=jnp.float32)
        + b_ref[...]
    ).astype(y_ref.dtype)


def _largest_tile(dim, target, align):
    """Largest tile <= target that divides `dim` and is a multiple of `align`
    (falls back to the full dim)."""
    if dim <= target:
        return dim
    t = (target // align) * align
    while t >= align:
        if dim % t == 0:
            return t
        t -= align
    return dim


def matmul_bias(x, w, b, *, row_tile=256, col_tile=1024):
    """x: (N, K), w: (K, M), b: (1, M) -> (N, M). Tiled over rows and columns."""
    N, K = x.shape
    M = w.shape[1]
    tn = _largest_tile(N, row_tile, 8)
    tm = _largest_tile(M, col_tile, 128)
    return pl.pallas_call(
        matmul_bias_kernel,
        out_shape=jax.ShapeDtypeStruct((N, M), jnp.float32),
        grid_spec=pltpu.PrefetchScalarGridSpec(
            num_scalar_prefetch=0,
            grid=(N // tn, M // tm),
            in_specs=[
                pl.BlockSpec((tn, K), lambda i, j: (i, 0)),
                pl.BlockSpec((K, tm), lambda i, j: (0, j)),
                pl.BlockSpec((1, tm), lambda i, j: (0, j)),
            ],
            out_specs=pl.BlockSpec((tn, tm), lambda i, j: (i, j)),
        ),
        compiler_params=pltpu.CompilerParams(
            dimension_semantics=("parallel", "parallel")),
    )(x, w, b)


# ---------------------------------------------------------------------------
# Fused multi-layer LSTM recurrence: one grid step per timestep, all layers
# computed per step, state carried in VMEM scratch across grid iterations.
# ---------------------------------------------------------------------------
def _make_fused_lstm_kernel(num_layers, hidden):
    H = hidden

    def kernel(*refs):
        # refs = [g1, whh0, (w_l, b_l) for l in 1..L-1, h_out, h_sc, c_sc]
        g1_ref = refs[0]                       # (B, 4H) precomputed layer-0 gates at step t
        whh0_ref = refs[1]                     # (H, 4H) layer-0 recurrent weights
        deep = refs[2:2 + 2 * (num_layers - 1)]
        h_out_ref = refs[2 + 2 * (num_layers - 1)]   # (B, H) top-layer h_t
        h_sc = refs[-2]                        # (L, B, H) carried hidden state
        c_sc = refs[-1]                        # (L, B, H) carried cell state

        t = pl.program_id(0)

        @pl.when(t == 0)
        def _():
            h_sc[...] = jnp.zeros_like(h_sc)
            c_sc[...] = jnp.zeros_like(c_sc)

        def cell(gates, c_prev):
            # PyTorch gate order: i, f, g, o. H is a multiple of 128 -> lane-aligned slices.
            i = jax.nn.sigmoid(gates[:, 0 * H:1 * H])
            f = jax.nn.sigmoid(gates[:, 1 * H:2 * H])
            g = jnp.tanh(gates[:, 2 * H:3 * H])
            o = jax.nn.sigmoid(gates[:, 3 * H:4 * H])
            c = f * c_prev + i * g
            h = o * jnp.tanh(c)
            return h, c

        # ---- layer 0: x_t @ W_ih0 + b0 was hoisted out of the recurrence ----
        gates0 = g1_ref[...] + jnp.dot(
            h_sc[0], whh0_ref[...], preferred_element_type=jnp.float32)
        h, c = cell(gates0, c_sc[0])
        h_sc[0] = h
        c_sc[0] = c

        # ---- layers 1..L-1: single stacked matmul [h_below, h_prev] @ [[W_ih];[W_hh]] ----
        for l in range(1, num_layers):
            w_ref = deep[2 * (l - 1)]          # (2H, 4H)
            b_ref = deep[2 * (l - 1) + 1]      # (1, 4H)
            xh = jnp.concatenate([h, h_sc[l]], axis=-1)           # (B, 2H)
            gates = jnp.dot(xh, w_ref[...],
                            preferred_element_type=jnp.float32) + b_ref[...]
            h, c = cell(gates, c_sc[l])
            h_sc[l] = h
            c_sc[l] = c

        h_out_ref[...] = h.astype(h_out_ref.dtype)

    return kernel


def fused_lstm(g1_flat, whh0, deep_weights, *, B, T, H):
    """g1_flat: (B, T*4H) precomputed layer-0 gates; whh0: (H, 4H);
    deep_weights: list of ((2H,4H), (1,4H)). Returns (B, T*H) top-layer hidden states."""
    assert H % 128 == 0, "hidden_size must be a multiple of 128 (module default 256 is fine)"
    num_layers = len(deep_weights) + 1

    flat_args, deep_specs = [], []
    for (w, b) in deep_weights:
        flat_args += [w, b]
        deep_specs += [
            pl.BlockSpec((2 * H, 4 * H), lambda t: (0, 0)),   # resident across grid
            pl.BlockSpec((1, 4 * H), lambda t: (0, 0)),
        ]

    return pl.pallas_call(
        _make_fused_lstm_kernel(num_layers, H),
        out_shape=jax.ShapeDtypeStruct((B, T * H), jnp.float32),
        grid_spec=pltpu.PrefetchScalarGridSpec(
            num_scalar_prefetch=0,
            grid=(T,),
            in_specs=[
                pl.BlockSpec((B, 4 * H), lambda t: (0, t)),   # layer-0 gate slab at step t
                pl.BlockSpec((H, 4 * H), lambda t: (0, 0)),   # layer-0 W_hh (resident)
            ] + deep_specs,
            out_specs=pl.BlockSpec((B, H), lambda t: (0, t)),  # h_t of top layer
            scratch_shapes=[
                pltpu.VMEM((num_layers, B, H), jnp.float32),   # h state per layer
                pltpu.VMEM((num_layers, B, H), jnp.float32),   # c state per layer
            ],
        ),
        compiler_params=pltpu.CompilerParams(dimension_semantics=("arbitrary",)),
    )(g1_flat, whh0, *flat_args)


# ---------------------------------------------------------------------------
# Forward pass (no transposes; all reshapes are contiguous and free)
# ---------------------------------------------------------------------------
@jax.jit
def text_generation_forward(x, params):
    """x: (B, T, V) float32 (batch_first like nn.LSTM). Returns logits (B, T, V)."""
    B, T, V = x.shape
    H = params["whh0_t"].shape[0]

    # (1) hoisted layer-0 input projection: one big matmul over all timesteps
    g1 = matmul_bias(x.reshape(B * T, V), params["w_ih0_t"], params["b0"])   # (B*T, 4H)
    g1_flat = g1.reshape(B, T * 4 * H)                                       # free reshape

    # (2) fused 2-layer recurrence, single pallas_call over T
    deep = [(d["w"], d["b"]) for d in params["deep"]]
    h_flat = fused_lstm(g1_flat, params["whh0_t"], deep, B=B, T=T, H=H)      # (B, T*H)

    # (3) tiled vocab projection
    y = matmul_bias(h_flat.reshape(B * T, H),
                    params["linear"]["w_t"], params["linear"]["bias"])       # (B*T, V)
    return y.reshape(B, T, V)


# ---------------------------------------------------------------------------
# Deterministic parameter init (mimics PyTorch U(-1/sqrt(H), 1/sqrt(H)))
# ---------------------------------------------------------------------------
def init_params(key, vocab_size, hidden_size, num_layers):
    H = hidden_size
    k = 1.0 / np.sqrt(H)

    def u(kk, shape):
        return jax.random.uniform(kk, shape, jnp.float32, -k, k)

    keys = jax.random.split(key, 4 * num_layers + 2)
    params = {}
    # layer 0
    w_ih = u(keys[0], (4 * H, vocab_size))
    w_hh = u(keys[1], (4 * H, H))
    b_ih = u(keys[2], (4 * H,))
    b_hh = u(keys[3], (4 * H,))
    params["w_ih0_t"] = w_ih.T                       # (V, 4H)
    params["whh0_t"] = w_hh.T                        # (H, 4H)
    params["b0"] = (b_ih + b_hh)[None, :]            # (1, 4H)
    # layers 1..L-1: stacked [W_ih; W_hh] so the kernel does one matmul per step
    params["deep"] = []
    for layer in range(1, num_layers):
        ks = keys[4 * layer: 4 * layer + 4]
        w_ih = u(ks[0], (4 * H, H))
        w_hh = u(ks[1], (4 * H, H))
        b_ih = u(ks[2], (4 * H,))
        b_hh = u(ks[3], (4 * H,))
        params["deep"].append({
            "w": jnp.concatenate([w_ih.T, w_hh.T], axis=0),   # (2H, 4H)
            "b": (b_ih + b_hh)[None, :],                      # (1, 4H)
        })
    w_lin = u(keys[-2], (vocab_size, H))
    b_lin = u(keys[-1], (vocab_size,))
    params["linear"] = {"w_t": w_lin.T, "bias": b_lin[None, :]}  # (H, V), (1, V)
    return params


# ---------------------------------------------------------------------------
# Pure-JAX reference for correctness
# ---------------------------------------------------------------------------
def _mm(a, b):
    return jnp.dot(a, b, precision=jax.lax.Precision.HIGHEST)


def reference_forward(x, params):
    B, T, V = x.shape
    H = params["whh0_t"].shape[0]
    h_seq = jnp.transpose(x, (1, 0, 2))  # (T, B, F)

    def run_layer(h_seq, w_in, w_hh, bias):
        h0 = jnp.zeros((B, H), jnp.float32)
        c0 = jnp.zeros((B, H), jnp.float32)

        def step(carry, x_t):
            h_prev, c_prev = carry
            gates = _mm(x_t, w_in) + _mm(h_prev, w_hh) + bias[0]
            i = jax.nn.sigmoid(gates[:, :H])
            f = jax.nn.sigmoid(gates[:, H:2 * H])
            g = jnp.tanh(gates[:, 2 * H:3 * H])
            o = jax.nn.sigmoid(gates[:, 3 * H:])
            c = f * c_prev + i * g
            h = o * jnp.tanh(c)
            return (h, c), h

        _, out = jax.lax.scan(step, (h0, c0), h_seq)
        return out

    h_seq = run_layer(h_seq, params["w_ih0_t"], params["whh0_t"], params["b0"])
    for d in params["deep"]:
        w = d["w"]  # (2H, 4H) stacked [W_ih; W_hh]
        h_seq = run_layer(h_seq, w[:H], w[H:], d["b"])
    h_bt = jnp.transpose(h_seq, (1, 0, 2)).reshape(B * T, H)
    y = _mm(h_bt, params["linear"]["w_t"]) + params["linear"]["bias"][0]
    return y.reshape(B, T, V)


# TODO(synk): sample_char / generate / cmd_generate (torch.multinomial host-side sampling
# loops) are not part of forward() and are not implemented as kernels.

if __name__ == "__main__":
    # Small lane-aligned shapes consistent with the module: (batch, seq, vocab) input.
    B, T, V, H, L = 8, 8, 128, 128, 2

    key = jax.random.PRNGKey(0)
    key, kx = jax.random.split(key)
    params = init_params(key, vocab_size=V, hidden_size=H, num_layers=L)
    x = jax.random.normal(kx, (B, T, V), jnp.float32)

    y = text_generation_forward(x, params)
    y = jax.block_until_ready(y)

    y_ref = reference_forward(x, params)
    np.testing.assert_allclose(np.asarray(y), np.asarray(y_ref), atol=2e-3, rtol=2e-3)

    assert y.shape == (B, T, V) and y.dtype == jnp.float32
    print("KERNEL_OK")
</pallas_src>

<mosaic_0001>
module attributes {stable_mosaic.version = 11 : i64} {
  func.func @matmul_bias_kernel(%arg0: i32, %arg1: i32, %arg2: memref<64x128xf32, #tpu.memory_space<vmem>>, %arg3: memref<128x512xf32, #tpu.memory_space<vmem>>, %arg4: memref<1x512xf32, #tpu.memory_space<vmem>>, %arg5: memref<64x512xf32, #tpu.memory_space<vmem>>) attributes {dimension_semantics = [#tpu.dimension_semantics<parallel>, #tpu.dimension_semantics<parallel>], iteration_bounds = array<i64: 1, 1>, scalar_prefetch = 0 : i64, scratch_operands = 0 : i64, tpu.core_type = #tpu.core_type<tc>, window_params = [{transform_indices = @transform_0, window_bounds = array<i64: 64, 128>}, {transform_indices = @transform_1, window_bounds = array<i64: 128, 512>}, {transform_indices = @transform_2, window_bounds = array<i64: 1, 512>}, {transform_indices = @transform_3, window_bounds = array<i64: 64, 512>}]} {
    %c0 = arith.constant 0 : index
    %c0_0 = arith.constant 0 : index
    %0 = vector.load %arg2[%c0, %c0_0] : memref<64x128xf32, #tpu.memory_space<vmem>>, vector<64x128xf32>
    %c0_1 = arith.constant 0 : index
    %c0_2 = arith.constant 0 : index
    %1 = vector.load %arg3[%c0_1, %c0_2] : memref<128x512xf32, #tpu.memory_space<vmem>>, vector<128x512xf32>
    %cst = arith.constant dense<0.000000e+00> : vector<64x512xf32>
    %2 = tpu.matmul %0, %1, %cst {dimension_numbers = #tpu.dot_dimension_numbers<[1], [0], [0], [1], [0, 0, 1, 1], [], []>} : vector<64x128xf32>, vector<128x512xf32>, vector<64x512xf32> -> vector<64x512xf32>
    %c0_3 = arith.constant 0 : index
    %c0_4 = arith.constant 0 : index
    %3 = vector.load %arg4[%c0_3, %c0_4] : memref<1x512xf32, #tpu.memory_space<vmem>>, vector<1x512xf32>
    %4 = vector.broadcast %3 : vector<1x512xf32> to vector<64x512xf32>
    %5 = arith.addf %2, %4 : vector<64x512xf32>
    %c0_5 = arith.constant 0 : index
    %c0_6 = arith.constant 0 : index
    %6 = vector.load %arg5[%c0_5, %c0_6] : memref<64x512xf32, #tpu.memory_space<vmem>>, vector<64x512xf32>
    tpu.vector_store %arg5[%c0_5, %c0_6], %5 {strides = array<i32>} : memref<64x512xf32, #tpu.memory_space<vmem>>, vector<64x512xf32>,
    return
  }
  func.func @transform_0(%arg0: i32, %arg1: i32) -> (i32, i32) {
    %c0_i32 = arith.constant 0 : i32
    %c0_i32_0 = arith.constant 0 : i32
    return %arg0, %c0_i32 : i32, i32
  }
  func.func @transform_1(%arg0: i32, %arg1: i32) -> (i32, i32) {
    %c0_i32 = arith.constant 0 : i32
    %c0_i32_0 = arith.constant 0 : i32
    return %c0_i32, %arg1 : i32, i32
  }
  func.func @transform_2(%arg0: i32, %arg1: i32) -> (i32, i32) {
    %c0_i32 = arith.constant 0 : i32
    %c0_i32_0 = arith.constant 0 : i32
    return %c0_i32, %arg1 : i32, i32
  }
  func.func @transform_3(%arg0: i32, %arg1: i32) -> (i32, i32) {
    %c0_i32 = arith.constant 0 : i32
    return %arg0, %arg1 : i32, i32
  }
}

module attributes {stable_mosaic.version = 11 : i64} {
  func.func @kernel(%arg0: i32, %arg1: memref<8x512xf32, #tpu.memory_space<vmem>>, %arg2: memref<128x512xf32, #tpu.memory_space<vmem>>, %arg3: memref<256x512xf32, #tpu.memory_space<vmem>>, %arg4: memref<1x512xf32, #tpu.memory_space<vmem>>, %arg5: memref<8x128xf32, #tpu.memory_space<vmem>>, %arg6: memref<2x8x128xf32, #tpu.memory_space<vmem>>, %arg7: memref<2x8x128xf32, #tpu.memory_space<vmem>>) attributes {dimension_semantics = [#tpu.dimension_semantics<arbitrary>], iteration_bounds = array<i64: 8>, scalar_prefetch = 0 : i64, scratch_operands = 2 : i64, tpu.core_type = #tpu.core_type<tc>, window_params = [{transform_indices = @transform_0, window_bounds = array<i64: 8, 512>}, {pipeline_mode = #tpu.pipeline_mode<synchronous>, transform_indices = @transform_1, window_bounds = array<i64: 128, 512>}, {pipeline_mode = #tpu.pipeline_mode<synchronous>, transform_indices = @transform_2, window_bounds = array<i64: 256, 512>}, {pipeline_mode = #tpu.pipeline_mode<synchronous>, transform_indices = @transform_3, window_bounds = array<i64: 1, 512>}, {transform_indices = @transform_4, window_bounds = array<i64: 8, 128>}]} {
    %c0_i32 = arith.constant 0 : i32
    %0 = arith.cmpi eq, %arg0, %c0_i32 : i32
    %1 = arith.extui %0 : i1 to i32
    %c0_i32_0 = arith.constant 0 : i32
    %2 = arith.cmpi ne, %1, %c0_i32_0 : i32
    scf.if %2 {
      %cst_40 = arith.constant 0.000000e+00 : f32
      %84 = vector.broadcast %cst_40 : f32 to vector<2x8x128xf32>
      %c0_41 = arith.constant 0 : index
      %c0_42 = arith.constant 0 : index
      %c0_43 = arith.constant 0 : index
      %85 = vector.load %arg6[%c0_41, %c0_42, %c0_43] : memref<2x8x128xf32, #tpu.memory_space<vmem>>, vector<2x8x128xf32>
      tpu.vector_store %arg6[%c0_41, %c0_42, %c0_43], %84 {strides = array<i32>} : memref<2x8x128xf32, #tpu.memory_space<vmem>>, vector<2x8x128xf32>,
      %cst_44 = arith.constant 0.000000e+00 : f32
      %86 = vector.broadcast %cst_44 : f32 to vector<2x8x128xf32>
      %c0_45 = arith.constant 0 : index
      %c0_46 = arith.constant 0 : index
      %c0_47 = arith.constant 0 : index
      %87 = vector.load %arg7[%c0_45, %c0_46, %c0_47] : memref<2x8x128xf32, #tpu.memory_space<vmem>>, vector<2x8x128xf32>
      tpu.vector_store %arg7[%c0_45, %c0_46, %c0_47], %86 {strides = array<i32>} : memref<2x8x128xf32, #tpu.memory_space<vmem>>, vector<2x8x128xf32>,
    } else {
    }
    %c0 = arith.constant 0 : index
    %c0_1 = arith.constant 0 : index
    %3 = vector.load %arg1[%c0, %c0_1] : memref<8x512xf32, #tpu.memory_space<vmem>>, vector<8x512xf32>
    %c0_2 = arith.constant 0 : index
    %c0_3 = arith.constant 0 : index
    %c0_4 = arith.constant 0 : index
    %4 = vector.load %arg6[%c0_2, %c0_3, %c0_4] : memref<2x8x128xf32, #tpu.memory_space<vmem>>, vector<1x8x128xf32>
    %5 = vector.shape_cast %4 : vector<1x8x128xf32> to vector<8x128xf32>
    %c0_5 = arith.constant 0 : index
    %c0_6 = arith.constant 0 : index
    %6 = vector.load %arg2[%c0_5, %c0_6] : memref<128x512xf32, #tpu.memory_space<vmem>>, vector<128x512xf32>
    %cst = arith.constant dense<0.000000e+00> : vector<8x512xf32>
    %7 = tpu.matmul %5, %6, %cst {dimension_numbers = #tpu.dot_dimension_numbers<[1], [0], [0], [1], [0, 0, 1, 1], [], []>} : vector<8x128xf32>, vector<128x512xf32>, vector<8x512xf32> -> vector<8x512xf32>
    %8 = arith.addf %3, %7 : vector<8x512xf32>
    %c0_7 = arith.constant 0 : index
    %c0_8 = arith.constant 0 : index
    %c0_9 = arith.constant 0 : index
    %9 = vector.load %arg7[%c0_7, %c0_8, %c0_9] : memref<2x8x128xf32, #tpu.memory_space<vmem>>, vector<1x8x128xf32>
    %10 = vector.shape_cast %9 : vector<1x8x128xf32> to vector<8x128xf32>
    %11 = vector.extract_strided_slice %8 {offsets = [0, 0], sizes = [8, 128], strides = [1, 1]} : vector<8x512xf32> to vector<8x128xf32>
    %12 = arith.negf %11 : vector<8x128xf32>
    %13 = math.exp %12 : vector<8x128xf32>
    %cst_10 = arith.constant 1.000000e+00 : f32
    %14 = vector.broadcast %cst_10 : f32 to vector<8x128xf32>
    %15 = arith.addf %14, %13 : vector<8x128xf32>
    %16 = arith.divf %14, %15 : vector<8x128xf32>
    %17 = vector.extract_strided_slice %8 {offsets = [0, 128], sizes = [8, 128], strides = [1, 1]} : vector<8x512xf32> to vector<8x128xf32>
    %18 = arith.negf %17 : vector<8x128xf32>
    %19 = math.exp %18 : vector<8x128xf32>
    %cst_11 = arith.constant 1.000000e+00 : f32
    %20 = vector.broadcast %cst_11 : f32 to vector<8x128xf32>
    %21 = arith.addf %20, %19 : vector<8x128xf32>
    %22 = arith.divf %20, %21 : vector<8x128xf32>
    %23 = vector.extract_strided_slice %8 {offsets = [0, 256], sizes = [8, 128], strides = [1, 1]} : vector<8x512xf32> to vector<8x128xf32>
    %24 = math.tanh %23 : vector<8x128xf32>
    %25 = vector.extract_strided_slice %8 {offsets = [0, 384], sizes = [8, 128], strides = [1, 1]} : vector<8x512xf32> to vector<8x128xf32>
    %26 = arith.negf %25 : vector<8x128xf32>
    %27 = math.exp %26 : vector<8x128xf32>
    %cst_12 = arith.constant 1.000000e+00 : f32
    %28 = vector.broadcast %cst_12 : f32 to vector<8x128xf32>
    %29 = arith.addf %28, %27 : vector<8x128xf32>
    %30 = arith.divf %28, %29 : vector<8x128xf32>
    %31 = arith.mulf %22, %10 : vector<8x128xf32>
    %32 = arith.mulf %16, %24 : vector<8x128xf32>
    %33 = arith.addf %31, %32 : vector<8x128xf32>
    %34 = math.tanh %33 : vector<8x128xf32>
    %35 = arith.mulf %30, %34 : vector<8x128xf32>
    %c0_13 = arith.constant 0 : index
    %c0_14 = arith.constant 0 : index
    %c0_15 = arith.constant 0 : index
    %36 = vector.load %arg6[%c0_13, %c0_14, %c0_15] : memref<2x8x128xf32, #tpu.memory_space<vmem>>, vector<1x8x128xf32>
    %37 = vector.shape_cast %36 : vector<1x8x128xf32> to vector<8x128xf32>
    %38 = vector.shape_cast %35 : vector<8x128xf32> to vector<1x8x128xf32>
    tpu.vector_store %arg6[%c0_13, %c0_14, %c0_15], %38 {strides = array<i32>} : memref<2x8x128xf32, #tpu.memory_space<vmem>>, vector<1x8x128xf32>,
    %c0_16 = arith.constant 0 : index
    %c0_17 = arith.constant 0 : index
    %c0_18 = arith.constant 0 : index
    %39 = vector.load %arg7[%c0_16, %c0_17, %c0_18] : memref<2x8x128xf32, #tpu.memory_space<vmem>>, vector<1x8x128xf32>
    %40 = vector.shape_cast %39 : vector<1x8x128xf32> to vector<8x128xf32>
    %41 = vector.shape_cast %33 : vector<8x128xf32> to vector<1x8x128xf32>
    tpu.vector_store %arg7[%c0_16, %c0_17, %c0_18], %41 {strides = array<i32>} : memref<2x8x128xf32, #tpu.memory_space<vmem>>, vector<1x8x128xf32>,
    %c1 = arith.constant 1 : index
    %c0_19 = arith.constant 0 : index
    %c0_20 = arith.constant 0 : index
    %42 = vector.load %arg6[%c1, %c0_19, %c0_20] : memref<2x8x128xf32, #tpu.memory_space<vmem>>, vector<1x8x128xf32>
    %43 = vector.shape_cast %42 : vector<1x8x128xf32> to vector<8x128xf32>
    %44 = tpu.concatenate %35, %43 in 1 : vector<8x128xf32>, vector<8x128xf32> -> vector<8x256xf32>
    %c0_21 = arith.constant 0 : index
    %c0_22 = arith.constant 0 : index
    %45 = vector.load %arg3[%c0_21, %c0_22] : memref<256x512xf32, #tpu.memory_space<vmem>>, vector<256x512xf32>
    %cst_23 = arith.constant dense<0.000000e+00> : vector<8x512xf32>
    %46 = tpu.matmul %44, %45, %cst_23 {dimension_numbers = #tpu.dot_dimension_numbers<[1], [0], [0], [1], [0, 0, 1, 1], [], []>} : vector<8x256xf32>, vector<256x512xf32>, vector<8x512xf32> -> vector<8x512xf32>
    %c0_24 = arith.constant 0 : index
    %c0_25 = arith.constant 0 : index
    %47 = vector.load %arg4[%c0_24, %c0_25] : memref<1x512xf32, #tpu.memory_space<vmem>>, vector<1x512xf32>
    %48 = vector.broadcast %47 : vector<1x512xf32> to vector<8x512xf32>
    %49 = arith.addf %46, %48 : vector<8x512xf32>
    %c1_26 = arith.constant 1 : index
    %c0_27 = arith.constant 0 : index
    %c0_28 = arith.constant 0 : index
    %50 = vector.load %arg7[%c1_26, %c0_27, %c0_28] : memref<2x8x128xf32, #tpu.memory_space<vmem>>, vector<1x8x128xf32>
    %51 = vector.shape_cast %50 : vector<1x8x128xf32> to vector<8x128xf32>
    %52 = vector.extract_strided_slice %49 {offsets = [0, 0], sizes = [8, 128], strides = [1, 1]} : vector<8x512xf32> to vector<8x128xf32>
    %53 = arith.negf %52 : vector<8x128xf32>
    %54 = math.exp %53 : vector<8x128xf32>
    %cst_29 = arith.constant 1.000000e+00 : f32
    %55 = vector.broadcast %cst_29 : f32 to vector<8x128xf32>
    %56 = arith.addf %55, %54 : vector<8x128xf32>
    %57 = arith.divf %55, %56 : vector<8x128xf32>
    %58 = vector.extract_strided_slice %49 {offsets = [0, 128], sizes = [8, 128], strides = [1, 1]} : vector<8x512xf32> to vector<8x128xf32>
    %59 = arith.negf %58 : vector<8x128xf32>
    %60 = math.exp %59 : vector<8x128xf32>
    %cst_30 = arith.constant 1.000000e+00 : f32
    %61 = vector.broadcast %cst_30 : f32 to vector<8x128xf32>
    %62 = arith.addf %61, %60 : vector<8x128xf32>
    %63 = arith.divf %61, %62 : vector<8x128xf32>
    %64 = vector.extract_strided_slice %49 {offsets = [0, 256], sizes = [8, 128], strides = [1, 1]} : vector<8x512xf32> to vector<8x128xf32>
    %65 = math.tanh %64 : vector<8x128xf32>
    %66 = vector.extract_strided_slice %49 {offsets = [0, 384], sizes = [8, 128], strides = [1, 1]} : vector<8x512xf32> to vector<8x128xf32>
    %67 = arith.negf %66 : vector<8x128xf32>
    %68 = math.exp %67 : vector<8x128xf32>
    %cst_31 = arith.constant 1.000000e+00 : f32
    %69 = vector.broadcast %cst_31 : f32 to vector<8x128xf32>
    %70 = arith.addf %69, %68 : vector<8x128xf32>
    %71 = arith.divf %69, %70 : vector<8x128xf32>
    %72 = arith.mulf %63, %51 : vector<8x128xf32>
    %73 = arith.mulf %57, %65 : vector<8x128xf32>
    %74 = arith.addf %72, %73 : vector<8x128xf32>
    %75 = math.tanh %74 : vector<8x128xf32>
    %76 = arith.mulf %71, %75 : vector<8x128xf32>
    %c1_32 = arith.constant 1 : index
    %c0_33 = arith.constant 0 : index
    %c0_34 = arith.constant 0 : index
    %77 = vector.load %arg6[%c1_32, %c0_33, %c0_34] : memref<2x8x128xf32, #tpu.memory_space<vmem>>, vector<1x8x128xf32>
    %78 = vector.shape_cast %77 : vector<1x8x128xf32> to vector<8x128xf32>
    %79 = vector.shape_cast %76 : vector<8x128xf32> to vector<1x8x128xf32>
    tpu.vector_store %arg6[%c1_32, %c0_33, %c0_34], %79 {strides = array<i32>} : memref<2x8x128xf32, #tpu.memory_space<vmem>>, vector<1x8x128xf32>,
    %c1_35 = arith.constant 1 : index
    %c0_36 = arith.constant 0 : index
    %c0_37 = arith.constant 0 : index
    %80 = vector.load %arg7[%c1_35, %c0_36, %c0_37] : memref<2x8x128xf32, #tpu.memory_space<vmem>>, vector<1x8x128xf32>
    %81 = vector.shape_cast %80 : vector<1x8x128xf32> to vector<8x128xf32>
    %82 = vector.shape_cast %74 : vector<8x128xf32> to vector<1x8x128xf32>
    tpu.vector_store %arg7[%c1_35, %c0_36, %c0_37], %82 {strides = array<i32>} : memref<2x8x128xf32, #tpu.memory_space<vmem>>, vector<1x8x128xf32>,
    %c0_38 = arith.constant 0 : index
    %c0_39 = arith.constant 0 : index
    %83 = vector.load %arg5[%c0_38, %c0_39] : memref<8x128xf32, #tpu.memory_space<vmem>>, vector<8x128xf32>
    tpu.vector_store %arg5[%c0_38, %c0_39], %76 {strides = array<i32>} : memref<8x128xf32, #tpu.memory_space<vmem>>, vector<8x128xf32>,
    return
  }
  func.func @transform_0(%arg0: i32) -> (i32, i32) {
    %c0_i32 = arith.constant 0 : i32
    %c0_i32_0 = arith.constant 0 : i32
    return %c0_i32, %arg0 : i32, i32
  }
  func.func @transform_1(%arg0: i32) -> (i32, i32) {
    %c0_i32 = arith.constant 0 : i32
    %c0_i32_0 = arith.constant 0 : i32
    %c0_i32_1 = arith.constant 0 : i32
    return %c0_i32, %c0_i32_0 : i32, i32
  }
  func.func @transform_2(%arg0: i32) -> (i32, i32) {
    %c0_i32 = arith.constant 0 : i32
    %c0_i32_0 = arith.constant 0 : i32
    %c0_i32_1 = arith.constant 0 : i32
    return %c0_i32, %c0_i32_0 : i32, i32
  }
  func.func @transform_3(%arg0: i32) -> (i32, i32) {
    %c0_i32 = arith.constant 0 : i32
    %c0_i32_0 = arith.constant 0 : i32
    %c0_i32_1 = arith.constant 0 : i32
    return %c0_i32, %c0_i32_0 : i32, i32
  }
  func.func @transform_4(%arg0: i32) -> (i32, i32) {
    %c0_i32 = arith.constant 0 : i32
    %c0_i32_0 = arith.constant 0 : i32
    return %c0_i32, %arg0 : i32, i32
  }
}

module attributes {stable_mosaic.version = 11 : i64} {
  func.func @matmul_bias_kernel(%arg0: i32, %arg1: i32, %arg2: memref<64x128xf32, #tpu.memory_space<vmem>>, %arg3: memref<128x128xf32, #tpu.memory_space<vmem>>, %arg4: memref<1x128xf32, #tpu.memory_space<vmem>>, %arg5: memref<64x128xf32, #tpu.memory_space<vmem>>) attributes {dimension_semantics = [#tpu.dimension_semantics<parallel>, #tpu.dimension_semantics<parallel>], iteration_bounds = array<i64: 1, 1>, scalar_prefetch = 0 : i64, scratch_operands = 0 : i64, tpu.core_type = #tpu.core_type<tc>, window_params = [{transform_indices = @transform_0, window_bounds = array<i64: 64, 128>}, {transform_indices = @transform_1, window_bounds = array<i64: 128, 128>}, {transform_indices = @transform_2, window_bounds = array<i64: 1, 128>}, {transform_indices = @transform_3, window_bounds = array<i64: 64, 128>}]} {
    %c0 = arith.constant 0 : index
    %c0_0 = arith.constant 0 : index
    %0 = vector.load %arg2[%c0, %c0_0] : memref<64x128xf32, #tpu.memory_space<vmem>>, vector<64x128xf32>
    %c0_1 = arith.constant 0 : index
    %c0_2 = arith.constant 0 : index
    %1 = vector.load %arg3[%c0_1, %c0_2] : memref<128x128xf32, #tpu.memory_space<vmem>>, vector<128x128xf32>
    %cst = arith.constant dense<0.000000e+00> : vector<64x128xf32>
    %2 = tpu.matmul %0, %1, %cst {dimension_numbers = #tpu.dot_dimension_numbers<[1], [0], [0], [1], [0, 0, 1, 1], [], []>} : vector<64x128xf32>, vector<128x128xf32>, vector<64x128xf32> -> vector<64x128xf32>
    %c0_3 = arith.constant 0 : index
    %c0_4 = arith.constant 0 : index
    %3 = vector.load %arg4[%c0_3, %c0_4] : memref<1x128xf32, #tpu.memory_space<vmem>>, vector<1x128xf32>
    %4 = vector.broadcast %3 : vector<1x128xf32> to vector<64x128xf32>
    %5 = arith.addf %2, %4 : vector<64x128xf32>
    %c0_5 = arith.constant 0 : index
    %c0_6 = arith.constant 0 : index
    %6 = vector.load %arg5[%c0_5, %c0_6] : memref<64x128xf32, #tpu.memory_space<vmem>>, vector<64x128xf32>
    tpu.vector_store %arg5[%c0_5, %c0_6], %5 {strides = array<i32>} : memref<64x128xf32, #tpu.memory_space<vmem>>, vector<64x128xf32>,
    return
  }
  func.func @transform_0(%arg0: i32, %arg1: i32) -> (i32, i32) {
    %c0_i32 = arith.constant 0 : i32
    %c0_i32_0 = arith.constant 0 : i32
    return %arg0, %c0_i32 : i32, i32
  }
  func.func @transform_1(%arg0: i32, %arg1: i32) -> (i32, i32) {
    %c0_i32 = arith.constant 0 : i32
    %c0_i32_0 = arith.constant 0 : i32
    return %c0_i32, %arg1 : i32, i32
  }
  func.func @transform_2(%arg0: i32, %arg1: i32) -> (i32, i32) {
    %c0_i32 = arith.constant 0 : i32
    %c0_i32_0 = arith.constant 0 : i32
    return %c0_i32, %arg1 : i32, i32
  }
  func.func @transform_3(%arg0: i32, %arg1: i32) -> (i32, i32) {
    %c0_i32 = arith.constant 0 : i32
    return %arg0, %arg1 : i32, i32
  }
}

</mosaic_0001>

<bundles_post_ra>
// kernel: text_generation_forward.3
= control target key start
LH: loop header
LB: loop body
LE: loop exit
PB: predicated region body
PF: predicated region fallthrough
CT: control target
= control target key end

     0   :  { %8 = vsyncpa [#allocation3], 0  ;;  %s672_s0 = inlined_call_operand.hbm [shape: f32[64,128], index: 0, kind: input, shape index: {}]   ;;  %s673_s1 = inlined_call_operand.hbm [shape: f32[128,512], index: 1, kind: input, shape index: {}]   ;;  %s674_s2 = inlined_call_operand.hbm [shape: f32[1,512], index: 2, kind: input, shape index: {}]   ;;  %s675_s3 = inlined_call_operand.vmem [shape: f32[64,512], index: 3, kind: output, shape index: {}]  }
   0x1   :  { %9 = vsyncpa [#allocation5], 0  ;;  %s483_s12 = smov [#allocation4]  }
   0x2   :  { %s27_s13 = sshll.u32 %s483_s12, 4  ;;  %s28_s13 = int_to_ptr.vmem [resolvable:$true] %s27_s13 }
   0x3   :  { %s427_s14 = scalar_lea.vmem %s28_s13, 8192  ;;  %p432_p1 = scmp.lt.s32.totalorder %s28_s13, %s28_s13 }
   0x4   :  { %p428_p0 = scmp.ne.s32.totalorder %s28_s13, %s427_s14  ;;  %p433_p2 = scmp.lt.s32.totalorder %s427_s14, %s427_s14 }
   0x6   :  { %p434_p3 = por %p433_p2, %p432_p1 }
   0x8   :  { %p435_p4 = pnand %p434_p3, %p428_p0 }
   0xa   :  { %438 = shalt.err (!%p435_p4)
}
   0xb   :  { %s484_s15 = smov 512   ;;  %s485_s16 = smov 32  }
   0xc   :  { %33 = dma.hbm_to_vmem [thread:$0]  %s673_s1, 8192, %s28_s13, [#allocation5], %s484_s15, %s484_s15, %s485_s16  }
   0xd   :  { %s486_s19 = smov [#allocation2]  }
   0xe   :  { %s15_s20 = sshll.u32 %s486_s19, 4  ;;  %s16_s20 = int_to_ptr.vmem [resolvable:$true] %s15_s20 }
   0xf   :  { %s447_s21 = scalar_lea.vmem %s16_s20, 1024  ;;  %p452_p6 = scmp.lt.s32.totalorder %s16_s20, %s16_s20 }
  0x10   :  { %p448_p5 = scmp.ne.s32.totalorder %s16_s20, %s447_s21  ;;  %p453_p7 = scmp.lt.s32.totalorder %s447_s21, %s447_s21 }
  0x12   :  { %p454_p8 = por %p453_p7, %p452_p6 }
  0x14   :  { %p455_p9 = pnand %p454_p8, %p448_p5 }
  0x16   :  { %458 = shalt.err (!%p455_p9)
}
  0x17   :  { %s487_s22 = smov 128   ;;  %s488_s23 = smov 8  }
  0x18   :  { %21 = dma.hbm_to_vmem [thread:$0]  %s672_s0, 1024, %s16_s20, [#allocation3], %s487_s22, %s487_s22, %s488_s23  }
  0x19   :  { %s489_s26 = smov [#allocation6]  }
  0x1a   :  { %s40_s27 = sshll.u32 %s489_s26, 4  ;;  %s41_s27 = int_to_ptr.vmem [resolvable:$true] %s40_s27 }
  0x1b   :  { %s467_s1 = scalar_lea.vmem %s41_s27, 64  ;;  %p472_p11 = scmp.lt.s32.totalorder %s41_s27, %s41_s27 }
  0x1c   :  { %p468_p10 = scmp.ne.s32.totalorder %s41_s27, %s467_s1  ;;  %p473_p12 = scmp.lt.s32.totalorder %s467_s1, %s467_s1 }
  0x1e   :  { %p474_p13 = por %p473_p12, %p472_p11 }
  0x20   :  { %p475_p0 = pnand %p474_p13, %p468_p10 }
  0x22   :  { %478 = shalt.err (!%p475_p0)
}
  0x23   :  { %43 = dma.hbm_to_vmem [thread:$0]  %s674_s2, 64, %s41_s27, [#allocation5]  }
  0x24   :  { %479 = dma.done.wait [#allocation3], 1024  }
  0x25   :  { %480 = vsyncadd [#allocation3], 4294966272 }
  0x26   :  { %481 = dma.done.wait [#allocation5], 8256  }
  0x27   :  { %482 = vsyncadd [#allocation5], 4294959040  ;;  %v490_v0 = vmov 0.0   ;;  %v122_v1 = vld [vmem:[#allocation4 + $0x1e8] sm:$0xff]  ;;  %v124_v2 = vld [vmem:[#allocation4 + $0x1f8] sm:$0xff] }
  0x28   :  { %211 = vmatprep.mubr.f32.mxu0 %v490_v0  ;;  %324 = vmatprep.mubr.f32.mxu1 %v490_v0  ;;  %v121_v3 = vld [vmem:[#allocation4 + $0x1e0] sm:$0xff]  ;;  %v123_v4 = vld [vmem:[#allocation4 + $0x1f0] sm:$0xff]  ;;  %v118_v5 = vld [vmem:[#allocation4 + $0x1c8] sm:$0xff] }
  0x29   :  { %147 = vmatprep.subr.mxu0 %v122_v1  ;;  %260 = vmatprep.subr.mxu1 %v124_v2  ;;  %v120_v6 = vld [vmem:[#allocation4 + $0x1d8] sm:$0xff]  ;;  %v117_v7 = vld [vmem:[#allocation4 + $0x1c0] sm:$0xff]  ;;  %v119_v8 = vld [vmem:[#allocation4 + $0x1d0] sm:$0xff] }
  0x2a   :  { %148 = vmatpush1.msra.mxu0 %v121_v3  ;;  %261 = vmatpush1.msra.mxu1 %v123_v4  ;;  %v114_v9 = vld [vmem:[#allocation4 + $0x1a8] sm:$0xff]  ;;  %v116_v10 = vld [vmem:[#allocation4 + $0x1b8] sm:$0xff]  ;;  %v113_v11 = vld [vmem:[#allocation4 + $0x1a0] sm:$0xff] }
  0x2b   :  { %149 = vmatprep.subr.mxu0 %v118_v5  ;;  %262 = vmatprep.subr.mxu1 %v120_v6  ;;  %v115_v12 = vld [vmem:[#allocation4 + $0x1b0] sm:$0xff]  ;;  %v110_v13 = vld [vmem:[#allocation4 + $0x188] sm:$0xff]  ;;  %v112_v14 = vld [vmem:[#allocation4 + $0x198] sm:$0xff] }
  0x2c   :  { %150 = vmatpush1.msra.mxu0 %v117_v7  ;;  %263 = vmatpush1.msra.mxu1 %v119_v8  ;;  %v109_v15 = vld [vmem:[#allocation4 + $0x180] sm:$0xff]  ;;  %v111_v16 = vld [vmem:[#allocation4 + $0x190] sm:$0xff]  ;;  %v106_v17 = vld [vmem:[#allocation4 + $0x168] sm:$0xff] }
  0x2d   :  { %151 = vmatprep.subr.mxu0 %v114_v9  ;;  %264 = vmatprep.subr.mxu1 %v116_v10  ;;  %v108_v18 = vld [vmem:[#allocation4 + $0x178] sm:$0xff]  ;;  %v105_v19 = vld [vmem:[#allocation4 + $0x160] sm:$0xff]  ;;  %v107_v20 = vld [vmem:[#allocation4 + $0x170] sm:$0xff]  ;;  %v127_v10 = vlaneseq }
  0x2e   :  { %152 = vmatpush1.msra.mxu0 %v113_v11  ;;  %265 = vmatpush1.msra.mxu1 %v115_v12  ;;  %v102_v21 = vld [vmem:[#allocation4 + $0x148] sm:$0xff]  ;;  %v104_v22 = vld [vmem:[#allocation4 + $0x158] sm:$0xff]  ;;  %v101_v23 = vld [vmem:[#allocation4 + $0x140] sm:$0xff] }
  0x2f   :  { %153 = vmatprep.subr.mxu0 %v110_v13  ;;  %266 = vmatprep.subr.mxu1 %v112_v14  ;;  %v103_v24 = vld [vmem:[#allocation4 + $0x150] sm:$0xff]  ;;  %v98_v25 = vld [vmem:[#allocation4 + $0x128] sm:$0xff]  ;;  %v100_v26 = vld [vmem:[#allocation4 + $0x138] sm:$0xff]  ;;  %v128_v11 = vshrl.u32 %v127_v10, 7 }
  0x30   :  { %154 = vmatpush1.msra.mxu0 %v109_v15  ;;  %267 = vmatpush1.msra.mxu1 %v111_v16  ;;  %v97_v27 = vld [vmem:[#allocation4 + $0x120] sm:$0xff]  ;;  %v99_v28 = vld [vmem:[#allocation4 + $0x130] sm:$0xff]  ;;  %v94_v29 = vld [vmem:[#allocation4 + $0x108] sm:$0xff] }
  0x31   :  { %155 = vmatprep.subr.mxu0 %v106_v17  ;;  %268 = vmatprep.subr.mxu1 %v108_v18  ;;  %v96_v30 = vld [vmem:[#allocation4 + $0x118] sm:$0xff]  ;;  %v93_v31 = vld [vmem:[#allocation4 + $0x100] sm:$0xff]  ;;  %v95_v32 = vld [vmem:[#allocation4 + $0x110] sm:$0xff]  ;;  %v129_v12 = vsub.s32 0, %v128_v11  ;;  %v137_v13 = vsub.s32 2, %v128_v11  ;;  %v133_v15 = vsub.s32 1, %v128_v11 }
  0x32   :  { %156 = vmatpush1.msra.mxu0 %v105_v19  ;;  %269 = vmatpush1.msra.mxu1 %v107_v20  ;;  %v90_v33 = vld [vmem:[#allocation4 + $0xe8] sm:$0xff]  ;;  %v92_v34 = vld [vmem:[#allocation4 + $0xf8] sm:$0xff]  ;;  %v89_v35 = vld [vmem:[#allocation4 + $0xe0] sm:$0xff]  ;;  %v141_v16 = vsub.s32 3, %v128_v11 }
  0x33   :  { %157 = vmatprep.subr.mxu0 %v102_v21  ;;  %270 = vmatprep.subr.mxu1 %v104_v22  ;;  %v91_v36 = vld [vmem:[#allocation4 + $0xf0] sm:$0xff]  ;;  %v86_v37 = vld [vmem:[#allocation4 + $0xc8] sm:$0xff]  ;;  %v88_v38 = vld [vmem:[#allocation4 + $0xd8] sm:$0xff] }
  0x34   :  { %158 = vmatpush1.msra.mxu0 %v101_v23  ;;  %271 = vmatpush1.msra.mxu1 %v103_v24  ;;  %v85_v39 = vld [vmem:[#allocation4 + $0xc0] sm:$0xff]  ;;  %v87_v40 = vld [vmem:[#allocation4 + $0xd0] sm:$0xff]  ;;  %v82_v41 = vld [vmem:[#allocation4 + $0xa8] sm:$0xff] }
  0x35   :  { %159 = vmatprep.subr.mxu0 %v98_v25  ;;  %272 = vmatprep.subr.mxu1 %v100_v26  ;;  %v84_v42 = vld [vmem:[#allocation4 + $0xb8] sm:$0xff]  ;;  %v81_v43 = vld [vmem:[#allocation4 + $0xa0] sm:$0xff]  ;;  %v83_v44 = vld [vmem:[#allocation4 + $0xb0] sm:$0xff] }
  0x36   :  { %160 = vmatpush1.msra.mxu0 %v97_v27  ;;  %273 = vmatpush1.msra.mxu1 %v99_v28  ;;  %v78_v45 = vld [vmem:[#allocation4 + $0x88] sm:$0xff]  ;;  %v80_v46 = vld [vmem:[#allocation4 + $0x98] sm:$0xff]  ;;  %v77_v47 = vld [vmem:[#allocation4 + $0x80] sm:$0xff] }
  0x37   :  { %161 = vmatprep.subr.mxu0 %v94_v29  ;;  %274 = vmatprep.subr.mxu1 %v96_v30  ;;  %v79_v48 = vld [vmem:[#allocation4 + $0x90] sm:$0xff]  ;;  %v74_v49 = vld [vmem:[#allocation4 + $0x68] sm:$0xff]  ;;  %v76_v50 = vld [vmem:[#allocation4 + $0x78] sm:$0xff] }
  0x38   :  { %162 = vmatpush1.msra.mxu0 %v93_v31  ;;  %275 = vmatpush1.msra.mxu1 %v95_v32  ;;  %v73_v51 = vld [vmem:[#allocation4 + $0x60] sm:$0xff]  ;;  %v75_v52 = vld [vmem:[#allocation4 + $0x70] sm:$0xff]  ;;  %v70_v53 = vld [vmem:[#allocation4 + $0x48] sm:$0xff] }
  0x39   :  { %163 = vmatprep.subr.mxu0 %v90_v33  ;;  %276 = vmatprep.subr.mxu1 %v92_v34  ;;  %v72_v54 = vld [vmem:[#allocation4 + $0x58] sm:$0xff]  ;;  %v69_v55 = vld [vmem:[#allocation4 + $0x40] sm:$0xff]  ;;  %v71_v56 = vld [vmem:[#allocation4 + $0x50] sm:$0xff] }
  0x3a   :  { %164 = vmatpush1.msra.mxu0 %v89_v35  ;;  %277 = vmatpush1.msra.mxu1 %v91_v36  ;;  %v66_v57 = vld [vmem:[#allocation4 + $0x28] sm:$0xff]  ;;  %v68_v58 = vld [vmem:[#allocation4 + $0x38] sm:$0xff]  ;;  %v65_v59 = vld [vmem:[#allocation4 + $0x20] sm:$0xff] }
  0x3b   :  { %165 = vmatprep.subr.mxu0 %v86_v37  ;;  %278 = vmatprep.subr.mxu1 %v88_v38  ;;  %v67_v60 = vld [vmem:[#allocation4 + $0x30] sm:$0xff]  ;;  %v62_v61 = vld [vmem:[#allocation4 + $0x8] sm:$0xff]  ;;  %v64_v62 = vld [vmem:[#allocation4 + $0x18] sm:$0xff] }
  0x3c   :  { %166 = vmatpush1.msra.mxu0 %v85_v39  ;;  %279 = vmatpush1.msra.mxu1 %v87_v40  ;;  %v61_v63 = vld [vmem:[#allocation4] sm:$0xff]  ;;  %v63_v1 = vld [vmem:[#allocation4 + $0x10] sm:$0xff]  ;;  %v54_v3 = vld [vmem:[#allocation2 + $0x8] sm:$0xff] }
  0x3d   :  { %167 = vmatprep.subr.mxu0 %v82_v41  ;;  %280 = vmatprep.subr.mxu1 %v84_v42  ;;  %v53_v2 = vld [vmem:[#allocation2] sm:$0xff]  ;;  %v55_v4 = vld [vmem:[#allocation2 + $0x10] sm:$0xff]  ;;  %v56_v5 = vld [vmem:[#allocation2 + $0x18] sm:$0xff] }
  0x3e   :  { %168 = vmatpush1.msra.mxu0 %v81_v43  ;;  %281 = vmatpush1.msra.mxu1 %v83_v44  ;;  %v57_v6 = vld [vmem:[#allocation2 + $0x20] sm:$0xff]  ;;  %v58_v7 = vld [vmem:[#allocation2 + $0x28] sm:$0xff]  ;;  %v59_v8 = vld [vmem:[#allocation2 + $0x30] sm:$0xff] }
  0x3f   :  { %169 = vmatprep.subr.mxu0 %v78_v45  ;;  %282 = vmatprep.subr.mxu1 %v80_v46  ;;  %v60_v9 = vld [vmem:[#allocation2 + $0x38] sm:$0xff]  ;;  %v125_v14 = vld [vmem:[#allocation6] sm:$0xf] }
  0x40   :  { %170 = vmatpush1.msra.mxu0 %v77_v47  ;;  %283 = vmatpush1.msra.mxu1 %v79_v48  ;;  %v536_v17 = vrot.slane %v125_v14, %v129_v12  ;;  %v538_v18 = vrot.slane %v125_v14, %v137_v13  ;;  %v540_v19 = vrot.slane %v125_v14, %v133_v15 }
  0x41   :  { %171 = vmatprep.subr.mxu0 %v74_v49  ;;  %284 = vmatprep.subr.mxu1 %v76_v50  ;;  %v542_v20 = vrot.slane %v125_v14, %v141_v16 }
  0x42   :  { %172 = vmatpush1.msra.mxu0 %v73_v51  ;;  %285 = vmatpush1.msra.mxu1 %v75_v52 }
  0x43   :  { %173 = vmatprep.subr.mxu0 %v70_v53  ;;  %286 = vmatprep.subr.mxu1 %v72_v54 }
  0x44   :  { %174 = vmatpush1.msra.mxu0 %v69_v55  ;;  %287 = vmatpush1.msra.mxu1 %v71_v56 }
  0x45   :  { %175 = vmatprep.subr.mxu0 %v66_v57  ;;  %288 = vmatprep.subr.mxu1 %v68_v58 }
  0x46   :  { %176 = vmatpush1.msra.mxu0 %v65_v59  ;;  %289 = vmatpush1.msra.mxu1 %v67_v60 }
  0x47   :  { %177 = vmatprep.subr.mxu0 %v62_v61  ;;  %290 = vmatprep.subr.mxu1 %v64_v62 }
  0x48   :  { %178 = vmatpush1.msra.mxu0 %v61_v63  ;;  %291 = vmatpush1.msra.mxu1 %v63_v1 }
  0x49   :  { %212 = vmatmul.mubr.f32.vlgmr.msra.gmra.mxu0 %v53_v2  ;;  %325 = vmatmul.mubr.f32.vlgmr.msra.gmra.mxu1 %v53_v2 }
  0x4a   :  { %217 = vmatprep.mubr.f32.mxu0 %v490_v0  ;;  %330 = vmatprep.mubr.f32.mxu1 %v490_v0 }
  0x4d   :  { %218 = vmatmul.mubr.f32.gmra.mxu0 %v54_v3  ;;  %331 = vmatmul.mubr.f32.gmra.mxu1 %v54_v3 }
  0x4e   :  { %223 = vmatprep.mubr.f32.mxu0 %v490_v0  ;;  %336 = vmatprep.mubr.f32.mxu1 %v490_v0 }
  0x51   :  { %224 = vmatmul.mubr.f32.gmra.mxu0 %v55_v4  ;;  %337 = vmatmul.mubr.f32.gmra.mxu1 %v55_v4 }
  0x52   :  { %229 = vmatprep.mubr.f32.mxu0 %v490_v0  ;;  %342 = vmatprep.mubr.f32.mxu1 %v490_v0 }
  0x55   :  { %230 = vmatmul.mubr.f32.gmra.mxu0 %v56_v5  ;;  %343 = vmatmul.mubr.f32.gmra.mxu1 %v56_v5 }
  0x56   :  { %235 = vmatprep.mubr.f32.mxu0 %v490_v0  ;;  %348 = vmatprep.mubr.f32.mxu1 %v490_v0 }
  0x59   :  { %236 = vmatmul.mubr.f32.gmra.mxu0 %v57_v6  ;;  %349 = vmatmul.mubr.f32.gmra.mxu1 %v57_v6 }
  0x5a   :  { %241 = vmatprep.mubr.f32.mxu0 %v490_v0  ;;  %354 = vmatprep.mubr.f32.mxu1 %v490_v0 }
  0x5d   :  { %242 = vmatmul.mubr.f32.gmra.mxu0 %v58_v7  ;;  %355 = vmatmul.mubr.f32.gmra.mxu1 %v58_v7 }
  0x5e   :  { %247 = vmatprep.mubr.f32.mxu0 %v490_v0  ;;  %360 = vmatprep.mubr.f32.mxu1 %v490_v0 }
  0x61   :  { %248 = vmatmul.mubr.f32.gmra.mxu0 %v59_v8  ;;  %361 = vmatmul.mubr.f32.gmra.mxu1 %v59_v8 }
  0x62   :  { %253 = vmatprep.mubr.f32.mxu0 %v490_v0  ;;  %366 = vmatprep.mubr.f32.mxu1 %v490_v0 }
  0x65   :  { %254 = vmatmul.mubr.f32.gmra.mxu0 %v60_v9  ;;  %367 = vmatmul.mubr.f32.gmra.mxu1 %v60_v9 }
 0x109   :  { %v213_v21 = vpop.f32.mrf.mxu0  ;;  %v326_v0 = vpop.f32.mrf.mxu1 }
 0x10a   :  { %v214_v22 = vadd.f32 %v213_v21, %v536_v17  ;;  %v327_v23 = vadd.f32 %v326_v0, %v538_v18 }
 0x10b   :  { %v215_v24 = vpop.f32.mrf.mxu0  ;;  %v328_v25 = vpop.f32.mrf.mxu1 }
 0x10c   :  { %373 = vst [vmem:[%s675_s3] sm:$0xff] %v214_v22  ;;  %375 = vst [vmem:[%s675_s3 + $0x10] sm:$0xff] %v327_v23  ;;  %v216_v26 = vadd.f32 %v215_v24, %v540_v19  ;;  %v329_v27 = vadd.f32 %v328_v25, %v542_v20 }
 0x10d   :  { %v219_v28 = vpop.f32.mrf.mxu0  ;;  %v332_v29 = vpop.f32.mrf.mxu1 }
 0x10e   :  { %374 = vst [vmem:[%s675_s3 + $0x8] sm:$0xff] %v216_v26  ;;  %376 = vst [vmem:[%s675_s3 + $0x18] sm:$0xff] %v329_v27  ;;  %v220_v30 = vadd.f32 %v219_v28, %v536_v17  ;;  %v333_v31 = vadd.f32 %v332_v29, %v538_v18 }
 0x10f   :  { %v221_v32 = vpop.f32.mrf.mxu0  ;;  %v334_v33 = vpop.f32.mrf.mxu1 }
 0x110   :  { %377 = vst [vmem:[%s675_s3 + $0x20] sm:$0xff] %v220_v30  ;;  %379 = vst [vmem:[%s675_s3 + $0x30] sm:$0xff] %v333_v31  ;;  %v222_v34 = vadd.f32 %v221_v32, %v540_v19  ;;  %v335_v35 = vadd.f32 %v334_v33, %v542_v20 }
 0x111   :  { %v225_v36 = vpop.f32.mrf.mxu0  ;;  %v338_v37 = vpop.f32.mrf.mxu1 }
 0x112   :  { %378 = vst [vmem:[%s675_s3 + $0x28] sm:$0xff] %v222_v34  ;;  %380 = vst [vmem:[%s675_s3 + $0x38] sm:$0xff] %v335_v35  ;;  %v226_v38 = vadd.f32 %v225_v36, %v536_v17  ;;  %v339_v39 = vadd.f32 %v338_v37, %v538_v18 }
 0x113   :  { %v227_v40 = vpop.f32.mrf.mxu0  ;;  %v340_v41 = vpop.f32.mrf.mxu1 }
 0x114   :  { %381 = vst [vmem:[%s675_s3 + $0x40] sm:$0xff] %v226_v38  ;;  %383 = vst [vmem:[%s675_s3 + $0x50] sm:$0xff] %v339_v39  ;;  %v228_v42 = vadd.f32 %v227_v40, %v540_v19  ;;  %v341_v43 = vadd.f32 %v340_v41, %v542_v20 }
 0x115   :  { %v231_v44 = vpop.f32.mrf.mxu0  ;;  %v344_v45 = vpop.f32.mrf.mxu1 }
 0x116   :  { %382 = vst [vmem:[%s675_s3 + $0x48] sm:$0xff] %v228_v42  ;;  %384 = vst [vmem:[%s675_s3 + $0x58] sm:$0xff] %v341_v43  ;;  %v232_v46 = vadd.f32 %v231_v44, %v536_v17  ;;  %v345_v47 = vadd.f32 %v344_v45, %v538_v18 }
 0x117   :  { %v233_v48 = vpop.f32.mrf.mxu0  ;;  %v346_v49 = vpop.f32.mrf.mxu1 }
 0x118   :  { %385 = vst [vmem:[%s675_s3 + $0x60] sm:$0xff] %v232_v46  ;;  %387 = vst [vmem:[%s675_s3 + $0x70] sm:$0xff] %v345_v47  ;;  %v234_v50 = vadd.f32 %v233_v48, %v540_v19  ;;  %v347_v51 = vadd.f32 %v346_v49, %v542_v20 }
 0x119   :  { %v237_v52 = vpop.f32.mrf.mxu0  ;;  %v350_v53 = vpop.f32.mrf.mxu1 }
 0x11a   :  { %386 = vst [vmem:[%s675_s3 + $0x68] sm:$0xff] %v234_v50  ;;  %388 = vst [vmem:[%s675_s3 + $0x78] sm:$0xff] %v347_v51  ;;  %v238_v54 = vadd.f32 %v237_v52, %v536_v17  ;;  %v351_v55 = vadd.f32 %v350_v53, %v538_v18 }
 0x11b   :  { %v239_v56 = vpop.f32.mrf.mxu0  ;;  %v352_v57 = vpop.f32.mrf.mxu1 }
 0x11c   :  { %389 = vst [vmem:[%s675_s3 + $0x80] sm:$0xff] %v238_v54  ;;  %391 = vst [vmem:[%s675_s3 + $0x90] sm:$0xff] %v351_v55  ;;  %v240_v58 = vadd.f32 %v239_v56, %v540_v19  ;;  %v353_v59 = vadd.f32 %v352_v57, %v542_v20 }
 0x11d   :  { %v243_v60 = vpop.f32.mrf.mxu0  ;;  %v356_v61 = vpop.f32.mrf.mxu1 }
 0x11e   :  { %390 = vst [vmem:[%s675_s3 + $0x88] sm:$0xff] %v240_v58  ;;  %392 = vst [vmem:[%s675_s3 + $0x98] sm:$0xff] %v353_v59  ;;  %v244_v62 = vadd.f32 %v243_v60, %v536_v17  ;;  %v357_v63 = vadd.f32 %v356_v61, %v538_v18 }
 0x11f   :  { %v245_v1 = vpop.f32.mrf.mxu0  ;;  %v358_v2 = vpop.f32.mrf.mxu1 }
 0x120   :  { %393 = vst [vmem:[%s675_s3 + $0xa0] sm:$0xff] %v244_v62  ;;  %395 = vst [vmem:[%s675_s3 + $0xb0] sm:$0xff] %v357_v63  ;;  %v246_v3 = vadd.f32 %v245_v1, %v540_v19  ;;  %v359_v4 = vadd.f32 %v358_v2, %v542_v20 }
 0x121   :  { %v249_v5 = vpop.f32.mrf.mxu0  ;;  %v362_v6 = vpop.f32.mrf.mxu1 }
 0x122   :  { %394 = vst [vmem:[%s675_s3 + $0xa8] sm:$0xff] %v246_v3  ;;  %396 = vst [vmem:[%s675_s3 + $0xb8] sm:$0xff] %v359_v4  ;;  %v250_v7 = vadd.f32 %v249_v5, %v536_v17  ;;  %v363_v8 = vadd.f32 %v362_v6, %v538_v18 }
 0x123   :  { %v251_v9 = vpop.f32.mrf.mxu0  ;;  %v364_v10 = vpop.f32.mrf.mxu1 }
 0x124   :  { %397 = vst [vmem:[%s675_s3 + $0xc0] sm:$0xff] %v250_v7  ;;  %399 = vst [vmem:[%s675_s3 + $0xd0] sm:$0xff] %v363_v8  ;;  %v252_v11 = vadd.f32 %v251_v9, %v540_v19  ;;  %v365_v12 = vadd.f32 %v364_v10, %v542_v20 }
 0x125   :  { %v255_v13 = vpop.f32.mrf.mxu0  ;;  %v368_v14 = vpop.f32.mrf.mxu1 }
 0x126   :  { %398 = vst [vmem:[%s675_s3 + $0xc8] sm:$0xff] %v252_v11  ;;  %400 = vst [vmem:[%s675_s3 + $0xd8] sm:$0xff] %v365_v12  ;;  %v256_v15 = vadd.f32 %v255_v13, %v536_v17  ;;  %v369_v16 = vadd.f32 %v368_v14, %v538_v18 }
 0x127   :  { %v257_v21 = vpop.f32.mrf.mxu0  ;;  %v370_v0 = vpop.f32.mrf.mxu1 }
 0x128   :  { %401 = vst [vmem:[%s675_s3 + $0xe0] sm:$0xff] %v256_v15  ;;  %403 = vst [vmem:[%s675_s3 + $0xf0] sm:$0xff] %v369_v16  ;;  %v258_v22 = vadd.f32 %v257_v21, %v540_v19  ;;  %v371_v23 = vadd.f32 %v370_v0, %v542_v20 }
 0x12a   :  { %402 = vst [vmem:[%s675_s3 + $0xe8] sm:$0xff] %v258_v22  ;;  %404 = vst [vmem:[%s675_s3 + $0xf8] sm:$0xff] %v371_v23 }
 0x12b   :  { %409 = vsyncpa [#allocation3], 1 }
 0x12c   :  { %410 = vsyncpa [#allocation5], 1 }

// kernel: text_generation_forward.5
= control target key start
LH: loop header
LB: loop body
LE: loop exit
PB: predicated region body
PF: predicated region fallthrough
CT: control target
= control target key end

     0   :  { %s402_s0 = inlined_call_operand.vmem [shape: f32[64,128], index: 0, kind: input, shape index: {}]   ;;  %s403_s1 = inlined_call_operand.vmem [shape: f32[128,128], index: 1, kind: input, shape index: {}]   ;;  %s404_s2 = inlined_call_operand.vmem [shape: f32[1,128], index: 2, kind: input, shape index: {}]   ;;  %s405_s3 = inlined_call_operand.hbm [shape: f32[64,128], index: 3, kind: output, shape index: {}]  }
   0x1   :  { %v38_v0 = vld [vmem:[%s403_s1 + $0x78] sm:$0xff]  ;;  %v37_v1 = vld [vmem:[%s403_s1 + $0x70] sm:$0xff]  ;;  %v36_v2 = vld [vmem:[%s403_s1 + $0x68] sm:$0xff] }
   0x2   :  { %200 = vmatprep.subr.mxu0 %v38_v0  ;;  %244 = vmatprep.subr.mxu1 %v38_v0  ;;  %v35_v3 = vld [vmem:[%s403_s1 + $0x60] sm:$0xff]  ;;  %v34_v4 = vld [vmem:[%s403_s1 + $0x58] sm:$0xff]  ;;  %v33_v5 = vld [vmem:[%s403_s1 + $0x50] sm:$0xff] }
   0x3   :  { %201 = vmatpush3.msra.mxu0 %v38_v0  ;;  %260 = vmatpush3.msra.mxu1 %v38_v0 }
   0x4   :  { %202 = vmatprep.subr.mxu0 %v37_v1  ;;  %245 = vmatprep.subr.mxu1 %v37_v1 }
   0x5   :  { %203 = vmatpush3.msra.mxu0 %v37_v1  ;;  %261 = vmatpush3.msra.mxu1 %v37_v1 }
   0x6   :  { %204 = vmatprep.subr.mxu0 %v36_v2  ;;  %246 = vmatprep.subr.mxu1 %v36_v2 }
   0x7   :  { %205 = vmatpush3.msra.mxu0 %v36_v2  ;;  %262 = vmatpush3.msra.mxu1 %v36_v2 }
   0x8   :  { %206 = vmatprep.subr.mxu0 %v35_v3  ;;  %247 = vmatprep.subr.mxu1 %v35_v3 }
   0x9   :  { %207 = vmatpush3.msra.mxu0 %v35_v3  ;;  %263 = vmatpush3.msra.mxu1 %v35_v3 }
   0xa   :  { %8 = vsyncpa [#allocation3], 0  ;;  %208 = vmatprep.subr.mxu0 %v34_v4  ;;  %248 = vmatprep.subr.mxu1 %v34_v4  ;;  %v32_v6 = vld [vmem:[%s403_s1 + $0x48] sm:$0xff]  ;;  %v31_v7 = vld [vmem:[%s403_s1 + $0x40] sm:$0xff]  ;;  %s301_s7 = smov [#allocation2]  }
   0xb   :  { %209 = vmatpush3.msra.mxu0 %v34_v4  ;;  %264 = vmatpush3.msra.mxu1 %v34_v4  ;;  %v30_v8 = vld [vmem:[%s403_s1 + $0x38] sm:$0xff]  ;;  %v29_v9 = vld [vmem:[%s403_s1 + $0x30] sm:$0xff]  ;;  %v28_v10 = vld [vmem:[%s403_s1 + $0x28] sm:$0xff]  ;;  %s164_s8 = sshll.u32 %s301_s7, 4  ;;  %s165_s8 = int_to_ptr.vmem [resolvable:$true] %s164_s8 }
   0xc   :  { %210 = vmatprep.subr.mxu0 %v33_v5  ;;  %249 = vmatprep.subr.mxu1 %v33_v5  ;;  %v27_v11 = vld [vmem:[%s403_s1 + $0x20] sm:$0xff]  ;;  %v26_v12 = vld [vmem:[%s403_s1 + $0x18] sm:$0xff]  ;;  %v25_v13 = vld [vmem:[%s403_s1 + $0x10] sm:$0xff]  ;;  %p284_p1 = scmp.lt.s32.totalorder %s165_s8, %s165_s8 }
   0xd   :  { %211 = vmatpush3.msra.mxu0 %v33_v5  ;;  %265 = vmatpush3.msra.mxu1 %v33_v5  ;;  %v24_v14 = vld [vmem:[%s403_s1 + $0x8] sm:$0xff]  ;;  %v23_v15 = vld [vmem:[%s403_s1] sm:$0xff]  ;;  %v17_v20 = vld [vmem:[%s402_s0 + $0x10] sm:$0xff] }
   0xe   :  { %212 = vmatprep.subr.mxu0 %v32_v6  ;;  %250 = vmatprep.subr.mxu1 %v32_v6  ;;  %v15_v16 = vld [vmem:[%s402_s0] sm:$0xff]  ;;  %v16_v18 = vld [vmem:[%s402_s0 + $0x8] sm:$0xff]  ;;  %v21_v21 = vld [vmem:[%s402_s0 + $0x30] sm:$0xff] }
   0xf   :  { %213 = vmatpush3.msra.mxu0 %v32_v6  ;;  %266 = vmatpush3.msra.mxu1 %v32_v6  ;;  %v19_v17 = vld [vmem:[%s402_s0 + $0x20] sm:$0xff]  ;;  %v20_v19 = vld [vmem:[%s402_s0 + $0x28] sm:$0xff]  ;;  %v18_v22 = vld [vmem:[%s402_s0 + $0x18] sm:$0xff] }
  0x10   :  { %214 = vmatprep.subr.mxu0 %v31_v7  ;;  %251 = vmatprep.subr.mxu1 %v31_v7  ;;  %v22_v23 = vld [vmem:[%s402_s0 + $0x38] sm:$0xff]  ;;  %v175_v24 = vld [vmem:[%s404_s2] ss:$0 sm:$0xff]  ;;  %s279_s0 = scalar_lea.vmem %s165_s8, 1024 }
  0x11   :  { %215 = vmatpush3.msra.mxu0 %v31_v7  ;;  %267 = vmatpush3.msra.mxu1 %v31_v7  ;;  %p280_p0 = scmp.ne.s32.totalorder %s165_s8, %s279_s0  ;;  %p285_p2 = scmp.lt.s32.totalorder %s279_s0, %s279_s0 }
  0x12   :  { %216 = vmatprep.subr.mxu0 %v30_v8  ;;  %252 = vmatprep.subr.mxu1 %v30_v8 }
  0x13   :  { %217 = vmatpush3.msra.mxu0 %v30_v8  ;;  %268 = vmatpush3.msra.mxu1 %v30_v8  ;;  %p286_p3 = por %p285_p2, %p284_p1 }
  0x14   :  { %218 = vmatprep.subr.mxu0 %v29_v9  ;;  %253 = vmatprep.subr.mxu1 %v29_v9 }
  0x15   :  { %219 = vmatpush3.msra.mxu0 %v29_v9  ;;  %269 = vmatpush3.msra.mxu1 %v29_v9  ;;  %p287_p4 = pnand %p286_p3, %p280_p0 }
  0x16   :  { %220 = vmatprep.subr.mxu0 %v28_v10  ;;  %254 = vmatprep.subr.mxu1 %v28_v10 }
  0x17   :  { %221 = vmatpush3.msra.mxu0 %v28_v10  ;;  %270 = vmatpush3.msra.mxu1 %v28_v10 }
  0x18   :  { %222 = vmatprep.subr.mxu0 %v27_v11  ;;  %255 = vmatprep.subr.mxu1 %v27_v11 }
  0x19   :  { %223 = vmatpush3.msra.mxu0 %v27_v11  ;;  %271 = vmatpush3.msra.mxu1 %v27_v11 }
  0x1a   :  { %224 = vmatprep.subr.mxu0 %v26_v12  ;;  %256 = vmatprep.subr.mxu1 %v26_v12 }
  0x1b   :  { %225 = vmatpush3.msra.mxu0 %v26_v12  ;;  %272 = vmatpush3.msra.mxu1 %v26_v12 }
  0x1c   :  { %226 = vmatprep.subr.mxu0 %v25_v13  ;;  %257 = vmatprep.subr.mxu1 %v25_v13 }
  0x1d   :  { %227 = vmatpush3.msra.mxu0 %v25_v13  ;;  %273 = vmatpush3.msra.mxu1 %v25_v13 }
  0x1e   :  { %228 = vmatprep.subr.mxu0 %v24_v14  ;;  %258 = vmatprep.subr.mxu1 %v24_v14 }
  0x1f   :  { %229 = vmatpush3.msra.mxu0 %v24_v14  ;;  %274 = vmatpush3.msra.mxu1 %v24_v14 }
  0x20   :  { %230 = vmatprep.subr.mxu0 %v23_v15  ;;  %259 = vmatprep.subr.mxu1 %v23_v15 }
  0x21   :  { %231 = vmatpush3.msra.mxu0 %v23_v15  ;;  %275 = vmatpush3.msra.mxu1 %v23_v15 }
  0x22   :  { %232 = vmatprep.mubr.f32.mxu0 %v15_v16  ;;  %238 = vmatprep.mubr.f32.mxu1 %v19_v17 }
  0x23   :  { %233 = vmatmul.mubr.f32.vlgmr.msra.gmra.mxu0 %v16_v18  ;;  %239 = vmatmul.mubr.f32.vlgmr.msra.gmra.mxu1 %v20_v19 }
  0x24   :  { %235 = vmatprep.mubr.f32.mxu0 %v17_v20  ;;  %241 = vmatprep.mubr.f32.mxu1 %v21_v21 }
  0x27   :  { %236 = vmatmul.mubr.f32.gmra.mxu0 %v18_v22  ;;  %242 = vmatmul.mubr.f32.gmra.mxu1 %v22_v23 }
  0xe3   :  { %v234_v25 = vpop.f32.mrf.mxu0  ;;  %v240_v26 = vpop.f32.mrf.mxu1 }
  0xe4   :  { %v118_v27 = vadd.f32 %v234_v25, %v175_v24  ;;  %v138_v28 = vadd.f32 %v240_v26, %v175_v24 }
  0xe5   :  { %v112_v29 = vpop.f32.mrf.mxu0  ;;  %v132_v30 = vpop.f32.mrf.mxu1 }
  0xe6   :  { %152 = vst [vmem:[#allocation2 + $0x8] sm:$0xff] %v118_v27  ;;  %156 = vst [vmem:[#allocation2 + $0x28] sm:$0xff] %v138_v28  ;;  %v113_v31 = vadd.f32 %v175_v24, %v112_v29  ;;  %v133_v32 = vadd.f32 %v175_v24, %v132_v30 }
  0xe7   :  { %v237_v33 = vpop.f32.mrf.mxu0  ;;  %v243_v34 = vpop.f32.mrf.mxu1 }
  0xe8   :  { %151 = vst [vmem:[#allocation2] sm:$0xff] %v113_v31  ;;  %155 = vst [vmem:[#allocation2 + $0x20] sm:$0xff] %v133_v32  ;;  %v128_v35 = vadd.f32 %v237_v33, %v175_v24  ;;  %v148_v36 = vadd.f32 %v243_v34, %v175_v24 }
  0xe9   :  { %v122_v37 = vpop.f32.mrf.mxu0  ;;  %v142_v38 = vpop.f32.mrf.mxu1 }
  0xea   :  { %154 = vst [vmem:[#allocation2 + $0x18] sm:$0xff] %v128_v35  ;;  %158 = vst [vmem:[#allocation2 + $0x38] sm:$0xff] %v148_v36  ;;  %v123_v39 = vadd.f32 %v175_v24, %v122_v37  ;;  %v143_v40 = vadd.f32 %v175_v24, %v142_v38 }
  0xec   :  { %153 = vst [vmem:[#allocation2 + $0x10] sm:$0xff] %v123_v39  ;;  %157 = vst [vmem:[#allocation2 + $0x30] sm:$0xff] %v143_v40 }
  0xed   :  { %290 = shalt.err (!%p287_p4)
}
  0xee   :  { %s302_s2 = smov 128   ;;  %s303_s9 = smov 8  }
  0xef   :  { %170 = dma.vmem_to_hbm [thread:$0]  %s165_s8, 1024, %s405_s3, [#allocation3], %s302_s2, %s302_s2, %s303_s9  }
  0xf0   :  { %299 = dma.done.wait [#allocation3], 1024  }
  0xf1   :  { %300 = vsyncadd [#allocation3], 4294966272 }
  0xf2   :  { %174 = vsyncpa [#allocation3], 1 }

// kernel: text_generation_forward.4
= control target key start
LH: loop header
LB: loop body
LE: loop exit
PB: predicated region body
PF: predicated region fallthrough
CT: control target
= control target key end

     0   :  { %9 = vsyncpa [#allocation5], 0  ;;  %s993_s15 = smov 0   ;;  %s1432_s0 = inlined_call_operand.vmem [shape: f32[8,4096], index: 0, kind: input, shape index: {}]   ;;  %s1433_s1 = inlined_call_operand.hbm [shape: f32[128,512], index: 1, kind: input, shape index: {}]   ;;  %s1434_s2 = inlined_call_operand.vmem [shape: f32[256,512], index: 2, kind: input, shape index: {}]   ;;  %s1435_s3 = inlined_call_operand.vmem [shape: f32[1,512], index: 3, kind: input, shape index: {}]   ;;  %s1436_s4 = inlined_call_operand.vmem [shape: f32[8,1024], index: 4, kind: output, shape index: {}]  }
   0x1 LB: > { %s999_s16 = sadd.s32 4294967295, %s961_s15   ;;  %p853_p0 = scmp.ge.s32.totalorder %s961_s15, 1  ;;  %s961_s15 = sphi %s993_s15, %s15_s15  }
   0x2   : > { %p135_p1 = scmp.lt.s32.totalorder %s961_s15, 9  ;;  %s963_s17 = smov [#allocation4]  }
   0x3   : > { %s147_s18 = sshll.u32 %s963_s17, 4  ;;  %p878_p4 = scmp.eq.s32.totalorder %s999_s16, 0  ;;  %s148_s18 = int_to_ptr.vmem [resolvable:$true] %s147_s18 }
   0x4   : > { %p1004_p3 = pnand %p853_p0, %p135_p1  ;;  %s936_s20 = scalar_lea.vmem %s148_s18, 8192 }
   0x5   : > { %p937_p8 = scmp.ne.s32.totalorder %s148_s18, %s936_s20  ;;  %p944_p11 = scmp.lt.s32.totalorder %s148_s18, %s148_s18 }
   0x6   : > { %p874_p5 = pneg %p1004_p3  ;;  %p945_p12 = scmp.lt.s32.totalorder %s936_s20, %s936_s20 }
   0x8   : > { %p875_p6 = pnand %p878_p4, %p874_p5  ;;  %p946_p13 = por %p945_p12, %p944_p11 }
   0xa   : > { %p927_p7 = pneg %p875_p6 }
   0xc   : > { %p939_p9 = pnand %p937_p8, %p927_p7 }
   0xe   : > { %p940_p10 = pneg %p939_p9 }
  0x10   : > { %p947_p2 = pnand %p946_p13, %p940_p10 }
  0x12   : > { %950 = shalt.err (!%p947_p2)
}
  0x13   : > { %s964_s21 = smov 512   ;;  %s965_s22 = smov 32  }
  0x14   : > { %877 = dma.hbm_to_vmem [thread:$0]  (!%p875_p6), %s1433_s1, 8192, %s148_s18, [#allocation5], %s964_s21, %s964_s21, %s965_s22  }
  0x15   : > { %178 = sbr.rel (%p1004_p3) target bundleno = 570 (0x23a), region = 36 }
  0x1a   : > { %956 = dma.done.wait (%p878_p4), [#allocation5], 8192  }
  0x1b   : > { %958 = vsyncadd (%p878_p4), [#allocation5], 4294959104  ;;  %s858_s25 = sshll.u32 %s999_s16, 2  ;;  %p209_p0 = scmp.lt.s32.totalorder %s999_s16, 7 }
  0x1c   : > { %p204_p1 = scmp.lt.s32.totalorder %s858_s25, 31  ;;  %p1438_p2 = scmp.ne.s32.totalorder %s999_s16, 0 }
  0x1d   : > { %s210_s26 = scalar_select %p209_p0, %s999_s16, 7 }
  0x1e   : > { %s1440_s25 = smov (!%p204_p1, %s858_s25), 31  ;;  %216 = sbr.rel (%p1438_p2) target bundleno = 38 (0x26), region = 44 }
  0x1f   : > { %s860_s27 = sshll.u32 %s210_s26, 3  ;;  %s859_s28 = sshll.u32 %s1440_s25, 3 }
  0x20   : > { %s1028_s5 = scalar_lea.vmem %s1436_s4, %s860_s27  ;;  %s1033_s8 = scalar_lea.vmem %s1432_s0, %s859_s28 }
  0x23   : > { %v966_v0 = vmov 0.0  }
  0x24   : > { %217 = vst [vmem:[#allocation2] sm:$0xff] %v966_v0  ;;  %218 = vst [vmem:[#allocation2 + $0x8] sm:$0xff] %v966_v0 }
  0x25   : > { %219 = vst [vmem:[#allocation3 + $0x8] sm:$0xff] %v966_v0  ;;  %220 = vst [vmem:[#allocation3] sm:$0xff] %v966_v0 }
  0x26 PF: > { %v287_v1 = vld [vmem:[#allocation4 + $0x1e8] sm:$0xff]  ;;  %v286_v2 = vld [vmem:[#allocation4 + $0x1e0] sm:$0xff]  ;;  %v967_v5 = vmov 0.0   ;;  %v289_v10 = vld [vmem:[#allocation4 + $0x1f8] sm:$0xff] }
  0x27   : > { %v283_v3 = vld [vmem:[#allocation4 + $0x1c8] sm:$0xff]  ;;  %290 = vmatprep.subr.mxu0 %v287_v1  ;;  %v282_v4 = vld [vmem:[#allocation4 + $0x1c0] sm:$0xff]  ;;  %354 = vmatprep.mubr.f32.mxu0 %v967_v5  ;;  %v288_v12 = vld [vmem:[#allocation4 + $0x1f0] sm:$0xff] }
  0x28   : > { %291 = vmatpush1.msra.mxu0 %v286_v2  ;;  %v279_v6 = vld [vmem:[#allocation4 + $0x1a8] sm:$0xff]  ;;  %425 = vmatprep.mubr.f32.mxu1 %v967_v5  ;;  %v278_v7 = vld [vmem:[#allocation4 + $0x1a0] sm:$0xff]  ;;  %v285_v14 = vld [vmem:[#allocation4 + $0x1d8] sm:$0xff] }
  0x29   : > { %292 = vmatprep.subr.mxu0 %v283_v3  ;;  %v275_v8 = vld [vmem:[#allocation4 + $0x188] sm:$0xff]  ;;  %v274_v9 = vld [vmem:[#allocation4 + $0x180] sm:$0xff]  ;;  %361 = vmatprep.subr.mxu1 %v289_v10  ;;  %v284_v15 = vld [vmem:[#allocation4 + $0x1d0] sm:$0xff] }
  0x2a   : > { %293 = vmatpush1.msra.mxu0 %v282_v4  ;;  %v271_v11 = vld [vmem:[#allocation4 + $0x168] sm:$0xff]  ;;  %v270_v13 = vld [vmem:[#allocation4 + $0x160] sm:$0xff]  ;;  %362 = vmatpush1.msra.mxu1 %v288_v12  ;;  %v281_v17 = vld [vmem:[#allocation4 + $0x1b8] sm:$0xff] }
  0x2b   : > { %294 = vmatprep.subr.mxu0 %v279_v6  ;;  %v267_v16 = vld [vmem:[#allocation4 + $0x148] sm:$0xff]  ;;  %363 = vmatprep.subr.mxu1 %v285_v14  ;;  %v266_v18 = vld [vmem:[#allocation4 + $0x140] sm:$0xff]  ;;  %v280_v19 = vld [vmem:[#allocation4 + $0x1b0] sm:$0xff] }
  0x2c   : > { %295 = vmatpush1.msra.mxu0 %v278_v7  ;;  %364 = vmatpush1.msra.mxu1 %v284_v15  ;;  %v277_v20 = vld [vmem:[#allocation4 + $0x198] sm:$0xff]  ;;  %v263_v21 = vld [vmem:[#allocation4 + $0x128] sm:$0xff]  ;;  %v276_v22 = vld [vmem:[#allocation4 + $0x190] sm:$0xff] }
  0x2d   : > { %296 = vmatprep.subr.mxu0 %v275_v8  ;;  %365 = vmatprep.subr.mxu1 %v281_v17  ;;  %v262_v23 = vld [vmem:[#allocation4 + $0x120] sm:$0xff]  ;;  %v273_v24 = vld [vmem:[#allocation4 + $0x178] sm:$0xff]  ;;  %v259_v25 = vld [vmem:[#allocation4 + $0x108] sm:$0xff] }
  0x2e   : > { %297 = vmatpush1.msra.mxu0 %v274_v9  ;;  %366 = vmatpush1.msra.mxu1 %v280_v19  ;;  %v272_v26 = vld [vmem:[#allocation4 + $0x170] sm:$0xff]  ;;  %v258_v27 = vld [vmem:[#allocation4 + $0x100] sm:$0xff]  ;;  %v269_v28 = vld [vmem:[#allocation4 + $0x158] sm:$0xff] }
  0x2f   : > { %298 = vmatprep.subr.mxu0 %v271_v11  ;;  %367 = vmatprep.subr.mxu1 %v277_v20  ;;  %v255_v29 = vld [vmem:[#allocation4 + $0xe8] sm:$0xff]  ;;  %v268_v30 = vld [vmem:[#allocation4 + $0x150] sm:$0xff]  ;;  %v254_v31 = vld [vmem:[#allocation4 + $0xe0] sm:$0xff] }
  0x30   : > { %299 = vmatpush1.msra.mxu0 %v270_v13  ;;  %368 = vmatpush1.msra.mxu1 %v276_v22  ;;  %v265_v32 = vld [vmem:[#allocation4 + $0x138] sm:$0xff]  ;;  %v251_v33 = vld [vmem:[#allocation4 + $0xc8] sm:$0xff]  ;;  %v264_v34 = vld [vmem:[#allocation4 + $0x130] sm:$0xff] }
  0x31   : > { %300 = vmatprep.subr.mxu0 %v267_v16  ;;  %369 = vmatprep.subr.mxu1 %v273_v24  ;;  %v250_v35 = vld [vmem:[#allocation4 + $0xc0] sm:$0xff]  ;;  %v261_v36 = vld [vmem:[#allocation4 + $0x118] sm:$0xff]  ;;  %v247_v37 = vld [vmem:[#allocation4 + $0xa8] sm:$0xff] }
  0x32   : > { %301 = vmatpush1.msra.mxu0 %v266_v18  ;;  %370 = vmatpush1.msra.mxu1 %v272_v26  ;;  %v260_v38 = vld [vmem:[#allocation4 + $0x110] sm:$0xff]  ;;  %v246_v39 = vld [vmem:[#allocation4 + $0xa0] sm:$0xff]  ;;  %v257_v40 = vld [vmem:[#allocation4 + $0xf8] sm:$0xff] }
  0x33   : > { %302 = vmatprep.subr.mxu0 %v263_v21  ;;  %371 = vmatprep.subr.mxu1 %v269_v28  ;;  %v243_v41 = vld [vmem:[#allocation4 + $0x88] sm:$0xff]  ;;  %v256_v42 = vld [vmem:[#allocation4 + $0xf0] sm:$0xff]  ;;  %v242_v43 = vld [vmem:[#allocation4 + $0x80] sm:$0xff] }
  0x34   : > { %303 = vmatpush1.msra.mxu0 %v262_v23  ;;  %372 = vmatpush1.msra.mxu1 %v268_v30  ;;  %v253_v44 = vld [vmem:[#allocation4 + $0xd8] sm:$0xff]  ;;  %v239_v45 = vld [vmem:[#allocation4 + $0x68] sm:$0xff]  ;;  %v252_v46 = vld [vmem:[#allocation4 + $0xd0] sm:$0xff] }
  0x35   : > { %304 = vmatprep.subr.mxu0 %v259_v25  ;;  %373 = vmatprep.subr.mxu1 %v265_v32  ;;  %v238_v47 = vld [vmem:[#allocation4 + $0x60] sm:$0xff]  ;;  %v249_v48 = vld [vmem:[#allocation4 + $0xb8] sm:$0xff]  ;;  %v235_v49 = vld [vmem:[#allocation4 + $0x48] sm:$0xff] }
  0x36   : > { %305 = vmatpush1.msra.mxu0 %v258_v27  ;;  %374 = vmatpush1.msra.mxu1 %v264_v34  ;;  %v248_v50 = vld [vmem:[#allocation4 + $0xb0] sm:$0xff]  ;;  %v234_v51 = vld [vmem:[#allocation4 + $0x40] sm:$0xff]  ;;  %v245_v52 = vld [vmem:[#allocation4 + $0x98] sm:$0xff] }
  0x37   : > { %306 = vmatprep.subr.mxu0 %v255_v29  ;;  %375 = vmatprep.subr.mxu1 %v261_v36  ;;  %v231_v53 = vld [vmem:[#allocation4 + $0x28] sm:$0xff]  ;;  %v244_v54 = vld [vmem:[#allocation4 + $0x90] sm:$0xff]  ;;  %v230_v55 = vld [vmem:[#allocation4 + $0x20] sm:$0xff] }
  0x38   : > { %307 = vmatpush1.msra.mxu0 %v254_v31  ;;  %376 = vmatpush1.msra.mxu1 %v260_v38  ;;  %v241_v56 = vld [vmem:[#allocation4 + $0x78] sm:$0xff]  ;;  %v227_v57 = vld [vmem:[#allocation4 + $0x8] sm:$0xff]  ;;  %v240_v58 = vld [vmem:[#allocation4 + $0x70] sm:$0xff] }
  0x39   : > { %308 = vmatprep.subr.mxu0 %v251_v33  ;;  %377 = vmatprep.subr.mxu1 %v257_v40  ;;  %v226_v59 = vld [vmem:[#allocation4] sm:$0xff]  ;;  %v237_v60 = vld [vmem:[#allocation4 + $0x58] sm:$0xff]  ;;  %v236_v62 = vld [vmem:[#allocation4 + $0x50] sm:$0xff] }
  0x3a   : > { %309 = vmatpush1.msra.mxu0 %v250_v35  ;;  %378 = vmatpush1.msra.mxu1 %v256_v42  ;;  %v225_v61 = vld [vmem:[#allocation2] sm:$0xff]  ;;  %v233_v63 = vld [vmem:[#allocation4 + $0x38] sm:$0xff]  ;;  %v526_v0 = vld [vmem:[%s1434_s2 + $0x1e8] sm:$0xff] }
  0x3b   : > { %310 = vmatprep.subr.mxu0 %v247_v37  ;;  %379 = vmatprep.subr.mxu1 %v253_v44  ;;  %v232_v1 = vld [vmem:[#allocation4 + $0x30] sm:$0xff]  ;;  %v525_v2 = vld [vmem:[%s1434_s2 + $0x1e0] sm:$0xff]  ;;  %v229_v3 = vld [vmem:[#allocation4 + $0x18] sm:$0xff] }
  0x3c   : > { %311 = vmatpush1.msra.mxu0 %v246_v39  ;;  %380 = vmatpush1.msra.mxu1 %v252_v46  ;;  %v522_v4 = vld [vmem:[%s1434_s2 + $0x1c8] sm:$0xff]  ;;  %v228_v5 = vld [vmem:[#allocation4 + $0x10] sm:$0xff]  ;;  %v521_v6 = vld [vmem:[%s1434_s2 + $0x1c0] sm:$0xff] }
  0x3d   : > { %312 = vmatprep.subr.mxu0 %v243_v41  ;;  %381 = vmatprep.subr.mxu1 %v249_v48  ;;  %v528_v7 = vld [vmem:[%s1434_s2 + $0x1f8] sm:$0xff]  ;;  %v527_v8 = vld [vmem:[%s1434_s2 + $0x1f0] sm:$0xff]  ;;  %v518_v9 = vld [vmem:[%s1434_s2 + $0x1a8] sm:$0xff] }
  0x3e   : > { %313 = vmatpush1.msra.mxu0 %v242_v43  ;;  %382 = vmatpush1.msra.mxu1 %v248_v50  ;;  %v524_v10 = vld [vmem:[%s1434_s2 + $0x1d8] sm:$0xff]  ;;  %v517_v11 = vld [vmem:[%s1434_s2 + $0x1a0] sm:$0xff]  ;;  %v523_v12 = vld [vmem:[%s1434_s2 + $0x1d0] sm:$0xff] }
  0x3f   : > { %314 = vmatprep.subr.mxu0 %v239_v45  ;;  %383 = vmatprep.subr.mxu1 %v245_v52  ;;  %v514_v13 = vld [vmem:[%s1434_s2 + $0x188] sm:$0xff]  ;;  %v520_v14 = vld [vmem:[%s1434_s2 + $0x1b8] sm:$0xff]  ;;  %v519_v15 = vld [vmem:[%s1434_s2 + $0x1b0] sm:$0xff] }
  0x40   : > { %315 = vmatpush1.msra.mxu0 %v238_v47  ;;  %384 = vmatpush1.msra.mxu1 %v244_v54  ;;  %v516_v16 = vld [vmem:[%s1434_s2 + $0x198] sm:$0xff]  ;;  %v513_v17 = vld [vmem:[%s1434_s2 + $0x180] sm:$0xff]  ;;  %v515_v18 = vld [vmem:[%s1434_s2 + $0x190] sm:$0xff] }
  0x41   : > { %316 = vmatprep.subr.mxu0 %v235_v49  ;;  %385 = vmatprep.subr.mxu1 %v241_v56  ;;  %v510_v19 = vld [vmem:[%s1434_s2 + $0x168] sm:$0xff]  ;;  %v512_v20 = vld [vmem:[%s1434_s2 + $0x178] sm:$0xff]  ;;  %v509_v21 = vld [vmem:[%s1434_s2 + $0x160] sm:$0xff] }
  0x42   : > { %317 = vmatpush1.msra.mxu0 %v234_v51  ;;  %386 = vmatpush1.msra.mxu1 %v240_v58  ;;  %v511_v22 = vld [vmem:[%s1434_s2 + $0x170] sm:$0xff]  ;;  %v506_v23 = vld [vmem:[%s1434_s2 + $0x148] sm:$0xff]  ;;  %v508_v24 = vld [vmem:[%s1434_s2 + $0x158] sm:$0xff] }
  0x43   : > { %318 = vmatprep.subr.mxu0 %v231_v53  ;;  %387 = vmatprep.subr.mxu1 %v237_v60  ;;  %v505_v25 = vld [vmem:[%s1434_s2 + $0x140] sm:$0xff]  ;;  %v507_v26 = vld [vmem:[%s1434_s2 + $0x150] sm:$0xff]  ;;  %v502_v27 = vld [vmem:[%s1434_s2 + $0x128] sm:$0xff] }
  0x44   : > { %319 = vmatpush1.msra.mxu0 %v230_v55  ;;  %388 = vmatpush1.msra.mxu1 %v236_v62  ;;  %v504_v28 = vld [vmem:[%s1434_s2 + $0x138] sm:$0xff]  ;;  %v501_v29 = vld [vmem:[%s1434_s2 + $0x120] sm:$0xff]  ;;  %v503_v30 = vld [vmem:[%s1434_s2 + $0x130] sm:$0xff] }
  0x45   : > { %320 = vmatprep.subr.mxu0 %v227_v57  ;;  %389 = vmatprep.subr.mxu1 %v233_v63  ;;  %v498_v31 = vld [vmem:[%s1434_s2 + $0x108] sm:$0xff]  ;;  %v500_v32 = vld [vmem:[%s1434_s2 + $0x118] sm:$0xff]  ;;  %v497_v33 = vld [vmem:[%s1434_s2 + $0x100] sm:$0xff] }
  0x46   : > { %321 = vmatpush1.msra.mxu0 %v226_v59  ;;  %390 = vmatpush1.msra.mxu1 %v232_v1  ;;  %v499_v34 = vld [vmem:[%s1434_s2 + $0x110] sm:$0xff]  ;;  %v494_v35 = vld [vmem:[%s1434_s2 + $0xe8] sm:$0xff]  ;;  %v496_v36 = vld [vmem:[%s1434_s2 + $0xf8] sm:$0xff] }
  0x47   : > { %355 = vmatmul.mubr.f32.vlgmr.msra.gmra.mxu0 %v225_v61  ;;  %615 = vmatprep.subr.mxu0 %v526_v0  ;;  %v493_v37 = vld [vmem:[%s1434_s2 + $0xe0] sm:$0xff]  ;;  %v495_v38 = vld [vmem:[%s1434_s2 + $0xf0] sm:$0xff]  ;;  %v490_v39 = vld [vmem:[%s1434_s2 + $0xc8] sm:$0xff] }
  0x48   : > { %616 = vmatpush1.msra.mxu0 %v525_v2  ;;  %391 = vmatprep.subr.mxu1 %v229_v3  ;;  %v492_v40 = vld [vmem:[%s1434_s2 + $0xd8] sm:$0xff]  ;;  %v489_v41 = vld [vmem:[%s1434_s2 + $0xc0] sm:$0xff]  ;;  %v491_v42 = vld [vmem:[%s1434_s2 + $0xd0] sm:$0xff] }
  0x49   : > { %617 = vmatprep.subr.mxu0 %v522_v4  ;;  %392 = vmatpush1.msra.mxu1 %v228_v5  ;;  %v486_v43 = vld [vmem:[%s1434_s2 + $0xa8] sm:$0xff]  ;;  %v488_v44 = vld [vmem:[%s1434_s2 + $0xb8] sm:$0xff]  ;;  %v485_v45 = vld [vmem:[%s1434_s2 + $0xa0] sm:$0xff] }
  0x4a   : > { %618 = vmatpush1.msra.mxu0 %v521_v6  ;;  %426 = vmatmul.mubr.f32.vlgmr.msra.gmra.mxu1 %v225_v61  ;;  %v487_v46 = vld [vmem:[%s1434_s2 + $0xb0] sm:$0xff]  ;;  %v482_v47 = vld [vmem:[%s1434_s2 + $0x88] sm:$0xff]  ;;  %v484_v48 = vld [vmem:[%s1434_s2 + $0x98] sm:$0xff] }
  0x4b   : > { %686 = vmatprep.subr.mxu1 %v528_v7  ;;  %619 = vmatprep.subr.mxu0 %v518_v9  ;;  %v481_v49 = vld [vmem:[%s1434_s2 + $0x80] sm:$0xff]  ;;  %v483_v50 = vld [vmem:[%s1434_s2 + $0x90] sm:$0xff]  ;;  %v478_v51 = vld [vmem:[%s1434_s2 + $0x68] sm:$0xff] }
  0x4c   : > { %687 = vmatpush1.msra.mxu1 %v527_v8  ;;  %620 = vmatpush1.msra.mxu0 %v517_v11  ;;  %v480_v52 = vld [vmem:[%s1434_s2 + $0x78] sm:$0xff]  ;;  %v477_v53 = vld [vmem:[%s1434_s2 + $0x60] sm:$0xff]  ;;  %v479_v54 = vld [vmem:[%s1434_s2 + $0x70] sm:$0xff] }
  0x4d   : > { %688 = vmatprep.subr.mxu1 %v524_v10  ;;  %621 = vmatprep.subr.mxu0 %v514_v13  ;;  %v474_v55 = vld [vmem:[%s1434_s2 + $0x48] sm:$0xff]  ;;  %v476_v56 = vld [vmem:[%s1434_s2 + $0x58] sm:$0xff]  ;;  %v473_v57 = vld [vmem:[%s1434_s2 + $0x40] sm:$0xff] }
  0x4e   : > { %689 = vmatpush1.msra.mxu1 %v523_v12  ;;  %622 = vmatpush1.msra.mxu0 %v513_v17  ;;  %v475_v58 = vld [vmem:[%s1434_s2 + $0x50] sm:$0xff]  ;;  %v470_v59 = vld [vmem:[%s1434_s2 + $0x28] sm:$0xff]  ;;  %v472_v60 = vld [vmem:[%s1434_s2 + $0x38] sm:$0xff] }
  0x4f   : > { %690 = vmatprep.subr.mxu1 %v520_v14  ;;  %623 = vmatprep.subr.mxu0 %v510_v19  ;;  %v469_v61 = vld [vmem:[%s1434_s2 + $0x20] sm:$0xff]  ;;  %v471_v62 = vld [vmem:[%s1434_s2 + $0x30] sm:$0xff]  ;;  %v466_v63 = vld [vmem:[%s1434_s2 + $0x8] sm:$0xff] }
  0x50   : > { %691 = vmatpush1.msra.mxu1 %v519_v15  ;;  %624 = vmatpush1.msra.mxu0 %v509_v21  ;;  %v468_v0 = vld [vmem:[%s1434_s2 + $0x18] sm:$0xff]  ;;  %v465_v1 = vld [vmem:[%s1434_s2] sm:$0xff]  ;;  %v467_v2 = vld [vmem:[%s1434_s2 + $0x10] sm:$0xff] }
  0x51   : > { %692 = vmatprep.subr.mxu1 %v516_v16  ;;  %625 = vmatprep.subr.mxu0 %v506_v23  ;;  %v590_v3 = vld [vmem:[%s1434_s2 + $0x3e8] sm:$0xff]  ;;  %v592_v4 = vld [vmem:[%s1434_s2 + $0x3f8] sm:$0xff]  ;;  %v589_v5 = vld [vmem:[%s1434_s2 + $0x3e0] sm:$0xff] }
  0x52   : > { %693 = vmatpush1.msra.mxu1 %v515_v18  ;;  %626 = vmatpush1.msra.mxu0 %v505_v25  ;;  %v591_v6 = vld [vmem:[%s1434_s2 + $0x3f0] sm:$0xff]  ;;  %v586_v7 = vld [vmem:[%s1434_s2 + $0x3c8] sm:$0xff]  ;;  %v588_v8 = vld [vmem:[%s1434_s2 + $0x3d8] sm:$0xff] }
  0x53   : > { %694 = vmatprep.subr.mxu1 %v512_v20  ;;  %627 = vmatprep.subr.mxu0 %v502_v27  ;;  %v585_v9 = vld [vmem:[%s1434_s2 + $0x3c0] sm:$0xff]  ;;  %v587_v10 = vld [vmem:[%s1434_s2 + $0x3d0] sm:$0xff]  ;;  %v582_v11 = vld [vmem:[%s1434_s2 + $0x3a8] sm:$0xff] }
  0x54   : > { %695 = vmatpush1.msra.mxu1 %v511_v22  ;;  %628 = vmatpush1.msra.mxu0 %v501_v29  ;;  %v584_v12 = vld [vmem:[%s1434_s2 + $0x3b8] sm:$0xff]  ;;  %v581_v13 = vld [vmem:[%s1434_s2 + $0x3a0] sm:$0xff]  ;;  %v583_v14 = vld [vmem:[%s1434_s2 + $0x3b0] sm:$0xff] }
  0x55   : > { %696 = vmatprep.subr.mxu1 %v508_v24  ;;  %629 = vmatprep.subr.mxu0 %v498_v31  ;;  %v578_v15 = vld [vmem:[%s1434_s2 + $0x388] sm:$0xff]  ;;  %v580_v16 = vld [vmem:[%s1434_s2 + $0x398] sm:$0xff]  ;;  %v577_v17 = vld [vmem:[%s1434_s2 + $0x380] sm:$0xff] }
  0x56   : > { %697 = vmatpush1.msra.mxu1 %v507_v26  ;;  %630 = vmatpush1.msra.mxu0 %v497_v33  ;;  %v579_v18 = vld [vmem:[%s1434_s2 + $0x390] sm:$0xff]  ;;  %v574_v19 = vld [vmem:[%s1434_s2 + $0x368] sm:$0xff]  ;;  %v576_v20 = vld [vmem:[%s1434_s2 + $0x378] sm:$0xff] }
  0x57   : > { %698 = vmatprep.subr.mxu1 %v504_v28  ;;  %631 = vmatprep.subr.mxu0 %v494_v35  ;;  %v573_v21 = vld [vmem:[%s1434_s2 + $0x360] sm:$0xff]  ;;  %v575_v22 = vld [vmem:[%s1434_s2 + $0x370] sm:$0xff]  ;;  %v570_v23 = vld [vmem:[%s1434_s2 + $0x348] sm:$0xff] }
  0x58   : > { %699 = vmatpush1.msra.mxu1 %v503_v30  ;;  %632 = vmatpush1.msra.mxu0 %v493_v37  ;;  %v572_v24 = vld [vmem:[%s1434_s2 + $0x358] sm:$0xff]  ;;  %v569_v25 = vld [vmem:[%s1434_s2 + $0x340] sm:$0xff]  ;;  %v571_v26 = vld [vmem:[%s1434_s2 + $0x350] sm:$0xff] }
  0x59   : > { %700 = vmatprep.subr.mxu1 %v500_v32  ;;  %633 = vmatprep.subr.mxu0 %v490_v39  ;;  %v566_v27 = vld [vmem:[%s1434_s2 + $0x328] sm:$0xff]  ;;  %v568_v28 = vld [vmem:[%s1434_s2 + $0x338] sm:$0xff]  ;;  %v565_v29 = vld [vmem:[%s1434_s2 + $0x320] sm:$0xff] }
  0x5a   : > { %701 = vmatpush1.msra.mxu1 %v499_v34  ;;  %634 = vmatpush1.msra.mxu0 %v489_v41  ;;  %v567_v30 = vld [vmem:[%s1434_s2 + $0x330] sm:$0xff]  ;;  %v562_v31 = vld [vmem:[%s1434_s2 + $0x308] sm:$0xff]  ;;  %v564_v32 = vld [vmem:[%s1434_s2 + $0x318] sm:$0xff] }
  0x5b   : > { %702 = vmatprep.subr.mxu1 %v496_v36  ;;  %635 = vmatprep.subr.mxu0 %v486_v43  ;;  %v561_v33 = vld [vmem:[%s1434_s2 + $0x300] sm:$0xff]  ;;  %v563_v34 = vld [vmem:[%s1434_s2 + $0x310] sm:$0xff]  ;;  %v558_v35 = vld [vmem:[%s1434_s2 + $0x2e8] sm:$0xff] }
  0x5c   : > { %703 = vmatpush1.msra.mxu1 %v495_v38  ;;  %636 = vmatpush1.msra.mxu0 %v485_v45  ;;  %v560_v36 = vld [vmem:[%s1434_s2 + $0x2f8] sm:$0xff]  ;;  %v557_v37 = vld [vmem:[%s1434_s2 + $0x2e0] sm:$0xff]  ;;  %v559_v38 = vld [vmem:[%s1434_s2 + $0x2f0] sm:$0xff] }
  0x5d   : > { %704 = vmatprep.subr.mxu1 %v492_v40  ;;  %637 = vmatprep.subr.mxu0 %v482_v47  ;;  %v554_v39 = vld [vmem:[%s1434_s2 + $0x2c8] sm:$0xff]  ;;  %v556_v40 = vld [vmem:[%s1434_s2 + $0x2d8] sm:$0xff]  ;;  %v553_v41 = vld [vmem:[%s1434_s2 + $0x2c0] sm:$0xff] }
  0x5e   : > { %705 = vmatpush1.msra.mxu1 %v491_v42  ;;  %638 = vmatpush1.msra.mxu0 %v481_v49  ;;  %v555_v42 = vld [vmem:[%s1434_s2 + $0x2d0] sm:$0xff]  ;;  %v550_v43 = vld [vmem:[%s1434_s2 + $0x2a8] sm:$0xff]  ;;  %v549_v45 = vld [vmem:[%s1434_s2 + $0x2a0] sm:$0xff] }
  0x5f   : > { %706 = vmatprep.subr.mxu1 %v488_v44  ;;  %639 = vmatprep.subr.mxu0 %v478_v51  ;;  %v552_v44 = vld [vmem:[%s1434_s2 + $0x2b8] sm:$0xff]  ;;  %v546_v47 = vld [vmem:[%s1434_s2 + $0x288] sm:$0xff]  ;;  %v545_v49 = vld [vmem:[%s1434_s2 + $0x280] sm:$0xff] }
  0x60   : > { %707 = vmatpush1.msra.mxu1 %v487_v46  ;;  %640 = vmatpush1.msra.mxu0 %v477_v53  ;;  %v551_v46 = vld [vmem:[%s1434_s2 + $0x2b0] sm:$0xff]  ;;  %v542_v51 = vld [vmem:[%s1434_s2 + $0x268] sm:$0xff]  ;;  %v541_v53 = vld [vmem:[%s1434_s2 + $0x260] sm:$0xff] }
  0x61   : > { %708 = vmatprep.subr.mxu1 %v484_v48  ;;  %641 = vmatprep.subr.mxu0 %v474_v55  ;;  %v548_v48 = vld [vmem:[%s1434_s2 + $0x298] sm:$0xff]  ;;  %v538_v55 = vld [vmem:[%s1434_s2 + $0x248] sm:$0xff] }
  0x62   : > { %709 = vmatpush1.msra.mxu1 %v483_v50  ;;  %642 = vmatpush1.msra.mxu0 %v473_v57  ;;  %v547_v50 = vld [vmem:[%s1434_s2 + $0x290] sm:$0xff]  ;;  %v537_v57 = vld [vmem:[%s1434_s2 + $0x240] sm:$0xff] }
  0x63   : > { %710 = vmatprep.subr.mxu1 %v480_v52  ;;  %643 = vmatprep.subr.mxu0 %v470_v59  ;;  %v544_v52 = vld [vmem:[%s1434_s2 + $0x278] sm:$0xff]  ;;  %v534_v59 = vld [vmem:[%s1434_s2 + $0x228] sm:$0xff] }
  0x64   : > { %711 = vmatpush1.msra.mxu1 %v479_v54  ;;  %644 = vmatpush1.msra.mxu0 %v469_v61  ;;  %v543_v54 = vld [vmem:[%s1434_s2 + $0x270] sm:$0xff]  ;;  %v533_v61 = vld [vmem:[%s1434_s2 + $0x220] sm:$0xff] }
  0x65   : > { %712 = vmatprep.subr.mxu1 %v476_v56  ;;  %645 = vmatprep.subr.mxu0 %v466_v63  ;;  %v540_v56 = vld [vmem:[%s1434_s2 + $0x258] sm:$0xff]  ;;  %v530_v63 = vld [vmem:[%s1434_s2 + $0x208] sm:$0xff] }
  0x66   : > { %713 = vmatpush1.msra.mxu1 %v475_v58  ;;  %646 = vmatpush1.msra.mxu0 %v465_v1  ;;  %v539_v58 = vld [vmem:[%s1434_s2 + $0x250] sm:$0xff]  ;;  %v529_v1 = vld [vmem:[%s1434_s2 + $0x200] sm:$0xff] }
  0x67   : > { %714 = vmatprep.subr.mxu1 %v472_v60  ;;  %647 = vmatprep.subr.mxu0 %v590_v3  ;;  %v536_v60 = vld [vmem:[%s1434_s2 + $0x238] sm:$0xff]  ;;  %v531_v3 = vld [vmem:[%s1434_s2 + $0x210] sm:$0xff] }
  0x68   : > { %715 = vmatpush1.msra.mxu1 %v471_v62  ;;  %648 = vmatpush2.msra.mxu0 %v589_v5  ;;  %v535_v62 = vld [vmem:[%s1434_s2 + $0x230] sm:$0xff] }
  0x69   : > { %716 = vmatprep.subr.mxu1 %v468_v0  ;;  %649 = vmatprep.subr.mxu0 %v586_v7  ;;  %v532_v0 = vld [vmem:[%s1434_s2 + $0x218] sm:$0xff] }
  0x6a   : > { %717 = vmatpush1.msra.mxu1 %v467_v2  ;;  %650 = vmatpush2.msra.mxu0 %v585_v9  ;;  %v464_v2 = vld [vmem:[#allocation2 + $0x8] sm:$0xff] }
  0x6b   : > { %718 = vmatprep.subr.mxu1 %v592_v4  ;;  %651 = vmatprep.subr.mxu0 %v582_v11  ;;  %v221_v4 = vld [vmem:[%s1033_s8] sm:$0xff] }
  0x6c   : > { %719 = vmatpush2.msra.mxu1 %v591_v6  ;;  %652 = vmatpush2.msra.mxu0 %v581_v13  ;;  %v222_v6 = vld [vmem:[%s1033_s8 + $0x8] sm:$0xff]  ;;  %v224_v13 = vld [vmem:[%s1033_s8 + $0x18] sm:$0xff] }
  0x6d   : > { %720 = vmatprep.subr.mxu1 %v588_v8  ;;  %653 = vmatprep.subr.mxu0 %v578_v15  ;;  %v223_v15 = vld [vmem:[%s1033_s8 + $0x10] sm:$0xff] }
  0x6e   : > { %721 = vmatpush2.msra.mxu1 %v587_v10  ;;  %654 = vmatpush2.msra.mxu0 %v577_v17 }
  0x6f   : > { %722 = vmatprep.subr.mxu1 %v584_v12  ;;  %655 = vmatprep.subr.mxu0 %v574_v19 }
  0x70   : > { %723 = vmatpush2.msra.mxu1 %v583_v14  ;;  %656 = vmatpush2.msra.mxu0 %v573_v21 }
  0x71   : > { %724 = vmatprep.subr.mxu1 %v580_v16  ;;  %657 = vmatprep.subr.mxu0 %v570_v23 }
  0x72   : > { %725 = vmatpush2.msra.mxu1 %v579_v18  ;;  %658 = vmatpush2.msra.mxu0 %v569_v25 }
  0x73   : > { %726 = vmatprep.subr.mxu1 %v576_v20  ;;  %659 = vmatprep.subr.mxu0 %v566_v27 }
  0x74   : > { %727 = vmatpush2.msra.mxu1 %v575_v22  ;;  %660 = vmatpush2.msra.mxu0 %v565_v29 }
  0x75   : > { %728 = vmatprep.subr.mxu1 %v572_v24  ;;  %661 = vmatprep.subr.mxu0 %v562_v31 }
  0x76   : > { %729 = vmatpush2.msra.mxu1 %v571_v26  ;;  %662 = vmatpush2.msra.mxu0 %v561_v33  ;;  %v436_v26 = vld [vmem:[#allocation3 + $0x8] sm:$0xff] }
  0x77   : > { %730 = vmatprep.subr.mxu1 %v568_v28  ;;  %663 = vmatprep.subr.mxu0 %v558_v35  ;;  %v595_v35 = vlaneseq }
  0x78   : > { %731 = vmatpush2.msra.mxu1 %v567_v30  ;;  %664 = vmatpush2.msra.mxu0 %v557_v37 }
  0x79   : > { %732 = vmatprep.subr.mxu1 %v564_v32  ;;  %665 = vmatprep.subr.mxu0 %v554_v39 }
  0x7a   : > { %733 = vmatpush2.msra.mxu1 %v563_v34  ;;  %666 = vmatpush2.msra.mxu0 %v553_v41 }
  0x7b   : > { %734 = vmatprep.subr.mxu1 %v560_v36  ;;  %667 = vmatprep.subr.mxu0 %v550_v43  ;;  %v596_v36 = vshrl.u32 %v595_v35, 7 }
  0x7c   : > { %735 = vmatpush2.msra.mxu1 %v559_v38  ;;  %668 = vmatpush2.msra.mxu0 %v549_v45  ;;  %v593_v38 = vld [vmem:[%s1435_s3] sm:$0xf] }
  0x7d   : > { %736 = vmatprep.subr.mxu1 %v556_v40  ;;  %669 = vmatprep.subr.mxu0 %v546_v47  ;;  %v597_v37 = vsub.s32 0, %v596_v36  ;;  %v601_v39 = vsub.s32 1, %v596_v36  ;;  %v609_v47 = vsub.s32 3, %v596_v36 }
  0x7e   : > { %737 = vmatpush2.msra.mxu1 %v555_v42  ;;  %670 = vmatpush2.msra.mxu0 %v545_v49 }
  0x7f   : > { %738 = vmatprep.subr.mxu1 %v552_v44  ;;  %671 = vmatprep.subr.mxu0 %v542_v51  ;;  %v598_v40 = vrot.slane %v593_v38, %v597_v37  ;;  %v602_v41 = vrot.slane %v593_v38, %v601_v39 }
  0x80   : > { %739 = vmatpush2.msra.mxu1 %v551_v46  ;;  %672 = vmatpush2.msra.mxu0 %v541_v53 }
  0x81   : > { %740 = vmatprep.subr.mxu1 %v548_v48  ;;  %673 = vmatprep.subr.mxu0 %v538_v55 }
  0x82   : > { %741 = vmatpush2.msra.mxu1 %v547_v50  ;;  %674 = vmatpush2.msra.mxu0 %v537_v57  ;;  %v610_v50 = vrot.slane %v593_v38, %v609_v47 }
  0x83   : > { %742 = vmatprep.subr.mxu1 %v544_v52  ;;  %675 = vmatprep.subr.mxu0 %v534_v59  ;;  %v605_v52 = vsub.s32 2, %v596_v36 }
  0x84   : > { %743 = vmatpush2.msra.mxu1 %v543_v54  ;;  %676 = vmatpush2.msra.mxu0 %v533_v61 }
  0x85   : > { %744 = vmatprep.subr.mxu1 %v540_v56  ;;  %677 = vmatprep.subr.mxu0 %v530_v63  ;;  %v606_v54 = vrot.slane %v593_v38, %v605_v52  ;;  %v758_v63 = vld [vmem:[#allocation3] sm:$0xff] }
  0x86   : > { %745 = vmatpush2.msra.mxu1 %v539_v58  ;;  %678 = vmatpush2.msra.mxu0 %v529_v1 }
  0x87   : > { %746 = vmatprep.subr.mxu1 %v536_v60  ;;  %679 = vmatprep.mubr.f32.mxu0 %v464_v2 }
  0x88   : > { %747 = vmatpush2.msra.mxu1 %v535_v62  ;;  %750 = vmatprep.mubr.f32.mxu1 %v464_v2 }
  0x89   : > { %748 = vmatprep.subr.mxu1 %v532_v0 }
  0x8a   : > { %749 = vmatpush2.msra.mxu1 %v531_v3 }
 0x107   : > { %v356_v5 = vpop.f32.mrf.mxu0 }
 0x108   : > { %v432_v7 = vadd.f32 %v356_v5, %v221_v4 }
 0x109   : > { %v358_v8 = vpop.f32.mrf.mxu0 }
 0x10a   : > { %v862_v9 = vmul.f32 -1.442695, %v432_v7  ;;  %v433_v10 = vadd.f32 %v358_v8, %v222_v6  ;;  %v427_v12 = vpop.f32.mrf.mxu1 }
 0x10b   : > { %v434_v17 = vadd.f32 %v427_v12, %v223_v15 }
 0x10c   : > { %893 = vpow2.f32 %v862_v9  ;;  %v863_v11 = vmul.f32 -1.442695, %v433_v10  ;;  %v429_v14 = vpop.f32.mrf.mxu1 }
 0x10d   : > { %v435_v16 = vadd.f32 %v429_v14, %v224_v13 }
 0x10e   : > { %895 = vpow2.f32 %v863_v11 }
 0x10f   : > { %v864_v18 = vmul.f32 -1.442695, %v435_v16  ;;  %897 = vtanh.f32 %v434_v17 }
 0x111   : > { %899 = vpow2.f32 %v864_v18 }
 0x119   : > { %v894_v19 = vpop.eup %893 }
 0x11a   : > { %v440_v20 = vadd.f32 1.0, %v894_v19 }
 0x11b   : > { %v896_v21 = vpop.eup %895 }
 0x11c   : > { %901 = vrcp.f32 %v440_v20  ;;  %v446_v22 = vadd.f32 1.0, %v896_v21  ;;  %v898_v23 = vpop.eup %897 }
 0x11e   : > { %903 = vrcp.f32 %v446_v22  ;;  %v900_v24 = vpop.eup %899 }
 0x11f   : > { %v453_v28 = vadd.f32 1.0, %v900_v24 }
 0x121   : > { %905 = vrcp.f32 %v453_v28 }
 0x129   : > { %v902_v25 = vpop.eup %901 }
 0x12a   : > { %v457_v30 = vmul.f32 %v902_v25, %v898_v23 }
 0x12b   : > { %v904_v27 = vpop.eup %903 }
 0x12c   : > { %v456_v29 = vmul.f32 %v904_v27, %v436_v26 }
 0x12e   : > { %v458_v31 = vadd.f32 %v457_v30, %v456_v29  ;;  %v906_v32 = vpop.eup %905 }
 0x130   : > { %907 = vtanh.f32 %v458_v31  ;;  %462 = vst [vmem:[#allocation3 + $0x8] sm:$0xff] %v458_v31 }
 0x13d   : > { %v908_v33 = vpop.eup %907 }
 0x13e   : > { %v460_v34 = vmul.f32 %v908_v33, %v906_v32 }
 0x140   : > { %461 = vst [vmem:[#allocation2] sm:$0xff] %v460_v34  ;;  %680 = vmatmul.mubr.f32.vlgmr.msra.gmra.mxu0 %v460_v34  ;;  %751 = vmatmul.mubr.f32.vlgmr.msra.gmra.mxu1 %v460_v34 }
 0x200   : > { %v681_v42 = vpop.f32.mrf.mxu0  ;;  %v752_v48 = vpop.f32.mrf.mxu1 }
 0x201   : > { %v682_v43 = vadd.f32 %v681_v42, %v598_v40  ;;  %v753_v57 = vadd.f32 %v752_v48, %v606_v54 }
 0x202   : > { %v683_v44 = vpop.f32.mrf.mxu0  ;;  %v754_v51 = vpop.f32.mrf.mxu1 }
 0x203   : > { %v865_v45 = vmul.f32 -1.442695, %v682_v43  ;;  %v684_v46 = vadd.f32 %v683_v44, %v602_v41  ;;  %v755_v53 = vadd.f32 %v754_v51, %v610_v50 }
 0x205   : > { %909 = vpow2.f32 %v865_v45  ;;  %v866_v49 = vmul.f32 -1.442695, %v684_v46  ;;  %v867_v55 = vmul.f32 -1.442695, %v755_v53 }
 0x207   : > { %911 = vpow2.f32 %v866_v49 }
 0x208   : > { %913 = vpow2.f32 %v867_v55 }
 0x212   : > { %v910_v56 = vpop.eup %909 }
 0x213   : > { %v762_v58 = vadd.f32 1.0, %v910_v56 }
 0x214   : > { %v912_v59 = vpop.eup %911 }
 0x215   : > { %915 = vrcp.f32 %v762_v58  ;;  %v768_v60 = vadd.f32 1.0, %v912_v59  ;;  %v914_v61 = vpop.eup %913 }
 0x216   : > { %917 = vtanh.f32 %v753_v57  ;;  %v775_v2 = vadd.f32 1.0, %v914_v61 }
 0x217   : > { %919 = vrcp.f32 %v768_v60 }
 0x218   : > { %921 = vrcp.f32 %v775_v2 }
 0x222   : > { %v916_v62 = vpop.eup %915 }
 0x223   : > { %v918_v0 = vpop.eup %917 }
 0x224   : > { %v920_v1 = vpop.eup %919  ;;  %v779_v3 = vmul.f32 %v918_v0, %v916_v62 }
 0x225   : > { %v778_v4 = vmul.f32 %v920_v1, %v758_v63  ;;  %v922_v6 = vpop.eup %921 }
 0x227   : > { %v780_v5 = vadd.f32 %v779_v3, %v778_v4 }
 0x229   : > { %923 = vtanh.f32 %v780_v5  ;;  %784 = vst [vmem:[#allocation3] sm:$0xff] %v780_v5 }
 0x236   : > { %v924_v7 = vpop.eup %923 }
 0x237   : > { %v782_v8 = vmul.f32 %v924_v7, %v922_v6 }
 0x239   : > { %783 = vst [vmem:[#allocation2 + $0x8] sm:$0xff] %v782_v8  ;;  %785 = vst [vmem:[%s1028_s5] sm:$0xff] %v782_v8 }
 0x23a PF: > { %s15_s15 = sadd.s32 1, %s961_s15  }
 0x23b   : > { %p12_p3 = scmp.ge.s32.totalorder %s15_s15, 10  }
 0x23d   :  { %14 = sbr.rel (!%p12_p3) target bundleno = 1 (0x1), region = 77 }
 0x242   :  { %805 = vsyncpa [#allocation5], 1 }
 0x243   :  { %807 = vsyncpa [#allocation5 + $0x1], 1 }

</bundles_post_ra>
